<compile_context>
chip_gen: v7x
topology: tpu7x:2x2x1
jax: 0.10.0
libtpu: 0.0.40
codegen_flags: <defaults>
</compile_context>

<pallas_src>
import functools

import jax
import jax.numpy as jnp
from jax.experimental import pallas as pl
from jax.experimental.pallas import tpu as pltpu


def _round_up(x, m):
    return (x + m - 1) // m * m


def _sigmoid_via_tanh(x):
    # sigmoid(x) == 0.5 * (tanh(x/2) + 1): one EUP tanh, no reciprocal/divide.
    return 0.5 * jnp.tanh(0.5 * x) + 0.5


# ----------------------------------------------------------------------------
# Pallas kernel: fused im2col + long-K matmul + f32 bias + LSTM0 gating.
# ----------------------------------------------------------------------------
def _lstm0_kernel(w_ref, b_ref, x_ref, cell_ref, hide_ref, p_ref, *, th, wp, ngf):
    """w_ref:    (3*ngf, 9*cin_p)   bf16  packed conv weights
       b_ref:    (3*ngf, 1)         f32   packed conv biases
       x_ref:    (1, cin_p, hp*wp)  bf16  zero-padded, flattened image (batch b)
       cell_ref: (1, ngf, th*wp)    bf16  output row-tile
       hide_ref: (1, ngf, th*wp)    bf16  output row-tile
       p_ref:    (9*cin_p, th*wp)   bf16  VMEM patch block (scratch)
    """
    j = pl.program_id(1)          # row-tile index within this batch element
    cin_p = x_ref.shape[1]
    tile_n = th * wp

    # Fused im2col: for each row offset dy load ONE lane-aligned window of the
    # resident flat image; the column offset dx is a static 0/1/2-lane shift
    # of that window.  Row padding + lane padding of the image guarantee the
    # +128 over-read stays in bounds and shifted junk only lands in discarded
    # (>= W) output columns.
    for dy in range(3):
        base = pl.multiple_of((j * th + dy) * wp, 128)
        rows = x_ref[0, :, pl.ds(base, tile_n + 128)]          # (cin_p, tile_n+128)
        for dx in range(3):
            t = dy * 3 + dx
            p_ref[t * cin_p:(t + 1) * cin_p, :] = rows[:, dx:dx + tile_n]

    # One long-K MXU contraction (K = 9*cin_p), f32 accumulation, f32 bias.
    acc = jnp.dot(w_ref[...], p_ref[...], preferred_element_type=jnp.float32)
    acc = acc + b_ref[...]                      # (3*ngf, 1) broadcast over lanes

    gx = jnp.tanh(acc[0 * ngf:1 * ngf, :])
    ix = _sigmoid_via_tanh(acc[1 * ngf:2 * ngf, :])
    ox = _sigmoid_via_tanh(acc[2 * ngf:3 * ngf, :])
    cell = jnp.tanh(gx * ix)
    hide = ox * cell

    cell_ref[0] = cell.astype(cell_ref.dtype)
    hide_ref[0] = hide.astype(hide_ref.dtype)


def _lstm0_pallas(w_all, bias, x_flat, *, ngf, th, wp):
    """w_all: (3*ngf, 9*cin_p) bf16, bias: (3*ngf, 1) f32,
       x_flat: (B, cin_p, hp*wp) bf16 with hp = H + 3."""
    B, cin_p, flat = x_flat.shape
    n3, kpack = w_all.shape
    hp = flat // wp
    h_out = hp - 3
    n_tiles = h_out // th
    tile_n = th * wp

    kernel = functools.partial(_lstm0_kernel, th=th, wp=wp, ngf=ngf)
    out_shape = (
        jax.ShapeDtypeStruct((B, ngf, h_out * wp), jnp.bfloat16),  # cell
        jax.ShapeDtypeStruct((B, ngf, h_out * wp), jnp.bfloat16),  # hide
    )
    grid_spec = pltpu.PrefetchScalarGridSpec(
        num_scalar_prefetch=0,
        grid=(B, n_tiles),
        in_specs=[
            pl.BlockSpec((n3, kpack), lambda b, j: (0, 0)),          # weights (resident)
            pl.BlockSpec((n3, 1), lambda b, j: (0, 0)),              # bias    (resident)
            pl.BlockSpec((1, cin_p, flat), lambda b, j: (b, 0, 0)),  # one DMA per batch
        ],
        out_specs=[
            pl.BlockSpec((1, ngf, tile_n), lambda b, j: (b, 0, j)),
            pl.BlockSpec((1, ngf, tile_n), lambda b, j: (b, 0, j)),
        ],
        scratch_shapes=[pltpu.VMEM((kpack, tile_n), jnp.bfloat16)],  # patch block
    )
    return pl.pallas_call(
        kernel,
        out_shape=out_shape,
        grid_spec=grid_spec,
        compiler_params=pltpu.CompilerParams(
            dimension_semantics=("parallel", "arbitrary"),
            vmem_limit_bytes=32 * 1024 * 1024,
        ),
    )(w_all, bias, x_flat)


# ----------------------------------------------------------------------------
# Parameter packing (done ONCE, outside the per-step jitted forward).
# ----------------------------------------------------------------------------
def pack_lstm0_params(params, cin_pad):
    """PyTorch conv weights (O, Cin, 3, 3) x3 + biases -> one bf16 matmul
    weight (3*ngf, 9*cin_pad) with K index k = (dy*3+dx)*cin_pad + c (matching
    the in-kernel patch-block layout), plus an f32 bias column (3*ngf, 1)."""
    def flat(w):
        o, cin = w.shape[0], w.shape[1]
        wt = jnp.transpose(w, (0, 2, 3, 1))                    # (O, 3, 3, Cin)
        wt = jnp.pad(wt, ((0, 0), (0, 0), (0, 0), (0, cin_pad - cin)))
        return wt.reshape(o, 9 * cin_pad)

    w_all = jnp.concatenate(
        [flat(params["w_gx"]), flat(params["w_ix"]), flat(params["w_ox"])],
        axis=0).astype(jnp.bfloat16)                           # (3*ngf, 9*cin_pad)
    b_all = jnp.concatenate(
        [params["b_gx"], params["b_ix"], params["b_ox"]], axis=0)
    return w_all, b_all.reshape(-1, 1).astype(jnp.float32)     # bias stays f32


# ----------------------------------------------------------------------------
# Forward: NCHW in, NCHW out.  No transposes anywhere.
# ----------------------------------------------------------------------------
def _pick_row_tile(h, wp, max_lanes=4096):
    """Largest divisor of h with th*wp <= max_lanes lanes, preferring >= 2 row
    tiles per batch so each (v7x) core gets multiple pipelined grid steps."""
    divisors = [d for d in range(1, h + 1) if h % d == 0]
    fits = [d for d in divisors if d * wp <= max_lanes] or [1]
    pref = [d for d in fits if h // d >= 2]
    return max(pref) if pref else max(fits)


def lstm0_forward(xt_nchw, w_all, bias, *, ngf):
    """xt_nchw: (B, in_c+ngf, H, W).  Returns (cell_1, hide_1), each
    (B, ngf, H, W) in bf16, matching the PyTorch module's forward."""
    B, cin, H, W = xt_nchw.shape
    cin_pad = w_all.shape[1] // 9
    wp = _round_up(W + 2, 128)      # lane-aligned padded row stride
    hp = H + 3                      # 1 top halo row + 2 bottom (halo + spill) rows
    th = _pick_row_tile(H, wp)

    # Single pad op (conv halo + lane pad + channel pad) + one flattening
    # reshape replace the previous HBM-side im2col.
    x = jnp.pad(xt_nchw.astype(jnp.bfloat16),
                ((0, 0), (0, cin_pad - cin), (1, 2), (1, wp - W - 1)))
    x_flat = x.reshape(B, cin_pad, hp * wp)

    cell, hide = _lstm0_pallas(w_all, bias, x_flat, ngf=ngf, th=th, wp=wp)
    cell = cell.reshape(B, ngf, H, wp)[:, :, :, :W]
    hide = hide.reshape(B, ngf, H, wp)[:, :, :, :W]
    return cell, hide


# ----------------------------------------------------------------------------
# Pure-JAX reference (f32) for the correctness sanity check.
# ----------------------------------------------------------------------------
def lstm0_reference(xt_nchw, params):
    def conv(x, w, b):
        y = jax.lax.conv_general_dilated(
            x, w, window_strides=(1, 1), padding="SAME",
            dimension_numbers=("NCHW", "OIHW", "NCHW"))
        return y + b[None, :, None, None]

    gx = jnp.tanh(conv(xt_nchw, params["w_gx"], params["b_gx"]))
    ix = jax.nn.sigmoid(conv(xt_nchw, params["w_ix"], params["b_ix"]))
    ox = jax.nn.sigmoid(conv(xt_nchw, params["w_ox"], params["b_ox"]))
    cell = jnp.tanh(gx * ix)
    hide = ox * cell
    return cell, hide


# ----------------------------------------------------------------------------
# Main
# ----------------------------------------------------------------------------
if __name__ == "__main__":
    in_c = 5
    ngf = 32
    B, H, W = 2, 16, 16
    Cin = in_c + ngf              # conv layers take in_c + ngf input channels
    cin_pad = _round_up(Cin, 16)  # bf16 sublane multiple per tap slab

    key = jax.random.PRNGKey(0)
    k_x, k_wg, k_wi, k_wo, k_bg, k_bi, k_bo = jax.random.split(key, 7)

    # Deterministic synthetic parameters (Conv2d(in_c+ngf, ngf, 3, pad=1) x3).
    fan_in = Cin * 3 * 3
    bound = 1.0 / jnp.sqrt(fan_in)
    params = {
        "w_gx": jax.random.uniform(k_wg, (ngf, Cin, 3, 3), jnp.float32, -bound, bound),
        "w_ix": jax.random.uniform(k_wi, (ngf, Cin, 3, 3), jnp.float32, -bound, bound),
        "w_ox": jax.random.uniform(k_wo, (ngf, Cin, 3, 3), jnp.float32, -bound, bound),
        "b_gx": jax.random.uniform(k_bg, (ngf,), jnp.float32, -bound, bound),
        "b_ix": jax.random.uniform(k_bi, (ngf,), jnp.float32, -bound, bound),
        "b_ox": jax.random.uniform(k_bo, (ngf,), jnp.float32, -bound, bound),
    }

    xt = jax.random.normal(k_x, (B, Cin, H, W), jnp.float32)  # NCHW, like PyTorch

    # Parameter-constant packing, hoisted out of the per-step path.
    w_all, bias = jax.block_until_ready(pack_lstm0_params(params, cin_pad))

    fwd = jax.jit(functools.partial(lstm0_forward, ngf=ngf))
    cell_1, hide_1 = fwd(xt, w_all, bias)
    jax.block_until_ready((cell_1, hide_1))

    # Sanity check against the pure-JAX f32 reference (bf16 matmul operands and
    # bf16 outputs -> loosened tolerance).
    cell_ref, hide_ref = lstm0_reference(xt, params)
    assert cell_1.shape == (B, ngf, H, W) and hide_1.shape == (B, ngf, H, W)
    assert jnp.max(jnp.abs(cell_1.astype(jnp.float32) - cell_ref)) < 5e-2
    assert jnp.max(jnp.abs(hide_1.astype(jnp.float32) - hide_ref)) < 5e-2

    print("KERNEL_OK")
</pallas_src>

<mosaic_0001>
module attributes {stable_mosaic.version = 11 : i64} {
  func.func @_lstm0_kernel(%arg0: i32, %arg1: i32, %arg2: memref<96x432xbf16, #tpu.memory_space<vmem>>, %arg3: memref<96x1xf32, #tpu.memory_space<vmem>>, %arg4: memref<1x48x2432xbf16, #tpu.memory_space<vmem>>, %arg5: memref<1x32x1024xbf16, #tpu.memory_space<vmem>>, %arg6: memref<1x32x1024xbf16, #tpu.memory_space<vmem>>, %arg7: memref<432x1024xbf16, #tpu.memory_space<vmem>>) attributes {dimension_semantics = [#tpu.dimension_semantics<parallel>, #tpu.dimension_semantics<arbitrary>], iteration_bounds = array<i64: 2, 2>, scalar_prefetch = 0 : i64, scratch_operands = 1 : i64, tpu.core_type = #tpu.core_type<tc>, window_params = [{pipeline_mode = #tpu.pipeline_mode<synchronous>, transform_indices = @transform_0, window_bounds = array<i64: 96, 432>}, {pipeline_mode = #tpu.pipeline_mode<synchronous>, transform_indices = @transform_1, window_bounds = array<i64: 96, 1>}, {transform_indices = @transform_2, window_bounds = array<i64: 1, 48, 2432>}, {transform_indices = @transform_3, window_bounds = array<i64: 1, 32, 1024>}, {transform_indices = @transform_4, window_bounds = array<i64: 1, 32, 1024>}]} {
    %c8_i32 = arith.constant 8 : i32
    %0 = arith.muli %arg1, %c8_i32 : i32
    %c0_i32 = arith.constant 0 : i32
    %1 = arith.addi %0, %c0_i32 : i32
    %c128_i32 = arith.constant 128 : i32
    %2 = arith.muli %1, %c128_i32 : i32
    %3 = tpu.assume_multiple %2, 128 : i32
    %c0 = arith.constant 0 : index
    %c0_0 = arith.constant 0 : index
    %4 = arith.index_cast %3 : i32 to index
    %5 = vector.load %arg4[%c0, %c0_0, %4] : memref<1x48x2432xbf16, #tpu.memory_space<vmem>>, vector<1x48x1152xbf16>
    %6 = vector.shape_cast %5 : vector<1x48x1152xbf16> to vector<48x1152xbf16>
    %7 = vector.extract_strided_slice %6 {offsets = [0, 0], sizes = [48, 1024], strides = [1, 1]} : vector<48x1152xbf16> to vector<48x1024xbf16>
    %c0_1 = arith.constant 0 : index
    %c0_2 = arith.constant 0 : index
    %8 = vector.load %arg7[%c0_1, %c0_2] : memref<432x1024xbf16, #tpu.memory_space<vmem>>, vector<48x1024xbf16>
    tpu.vector_store %arg7[%c0_1, %c0_2], %7 {strides = array<i32>} : memref<432x1024xbf16, #tpu.memory_space<vmem>>, vector<48x1024xbf16>,
    %9 = vector.extract_strided_slice %6 {offsets = [0, 1], sizes = [48, 1024], strides = [1, 1]} : vector<48x1152xbf16> to vector<48x1024xbf16>
    %c48 = arith.constant 48 : index
    %c0_3 = arith.constant 0 : index
    %10 = vector.load %arg7[%c48, %c0_3] : memref<432x1024xbf16, #tpu.memory_space<vmem>>, vector<48x1024xbf16>
    tpu.vector_store %arg7[%c48, %c0_3], %9 {strides = array<i32>} : memref<432x1024xbf16, #tpu.memory_space<vmem>>, vector<48x1024xbf16>,
    %11 = vector.extract_strided_slice %6 {offsets = [0, 2], sizes = [48, 1024], strides = [1, 1]} : vector<48x1152xbf16> to vector<48x1024xbf16>
    %c96 = arith.constant 96 : index
    %c0_4 = arith.constant 0 : index
    %12 = vector.load %arg7[%c96, %c0_4] : memref<432x1024xbf16, #tpu.memory_space<vmem>>, vector<48x1024xbf16>
    tpu.vector_store %arg7[%c96, %c0_4], %11 {strides = array<i32>} : memref<432x1024xbf16, #tpu.memory_space<vmem>>, vector<48x1024xbf16>,
    %c8_i32_5 = arith.constant 8 : i32
    %13 = arith.muli %arg1, %c8_i32_5 : i32
    %c1_i32 = arith.constant 1 : i32
    %14 = arith.addi %13, %c1_i32 : i32
    %c128_i32_6 = arith.constant 128 : i32
    %15 = arith.muli %14, %c128_i32_6 : i32
    %16 = tpu.assume_multiple %15, 128 : i32
    %c0_7 = arith.constant 0 : index
    %c0_8 = arith.constant 0 : index
    %17 = arith.index_cast %16 : i32 to index
    %18 = vector.load %arg4[%c0_7, %c0_8, %17] : memref<1x48x2432xbf16, #tpu.memory_space<vmem>>, vector<1x48x1152xbf16>
    %19 = vector.shape_cast %18 : vector<1x48x1152xbf16> to vector<48x1152xbf16>
    %20 = vector.extract_strided_slice %19 {offsets = [0, 0], sizes = [48, 1024], strides = [1, 1]} : vector<48x1152xbf16> to vector<48x1024xbf16>
    %c144 = arith.constant 144 : index
    %c0_9 = arith.constant 0 : index
    %21 = vector.load %arg7[%c144, %c0_9] : memref<432x1024xbf16, #tpu.memory_space<vmem>>, vector<48x1024xbf16>
    tpu.vector_store %arg7[%c144, %c0_9], %20 {strides = array<i32>} : memref<432x1024xbf16, #tpu.memory_space<vmem>>, vector<48x1024xbf16>,
    %22 = vector.extract_strided_slice %19 {offsets = [0, 1], sizes = [48, 1024], strides = [1, 1]} : vector<48x1152xbf16> to vector<48x1024xbf16>
    %c192 = arith.constant 192 : index
    %c0_10 = arith.constant 0 : index
    %23 = vector.load %arg7[%c192, %c0_10] : memref<432x1024xbf16, #tpu.memory_space<vmem>>, vector<48x1024xbf16>
    tpu.vector_store %arg7[%c192, %c0_10], %22 {strides = array<i32>} : memref<432x1024xbf16, #tpu.memory_space<vmem>>, vector<48x1024xbf16>,
    %24 = vector.extract_strided_slice %19 {offsets = [0, 2], sizes = [48, 1024], strides = [1, 1]} : vector<48x1152xbf16> to vector<48x1024xbf16>
    %c240 = arith.constant 240 : index
    %c0_11 = arith.constant 0 : index
    %25 = vector.load %arg7[%c240, %c0_11] : memref<432x1024xbf16, #tpu.memory_space<vmem>>, vector<48x1024xbf16>
    tpu.vector_store %arg7[%c240, %c0_11], %24 {strides = array<i32>} : memref<432x1024xbf16, #tpu.memory_space<vmem>>, vector<48x1024xbf16>,
    %c8_i32_12 = arith.constant 8 : i32
    %26 = arith.muli %arg1, %c8_i32_12 : i32
    %c2_i32 = arith.constant 2 : i32
    %27 = arith.addi %26, %c2_i32 : i32
    %c128_i32_13 = arith.constant 128 : i32
    %28 = arith.muli %27, %c128_i32_13 : i32
    %29 = tpu.assume_multiple %28, 128 : i32
    %c0_14 = arith.constant 0 : index
    %c0_15 = arith.constant 0 : index
    %30 = arith.index_cast %29 : i32 to index
    %31 = vector.load %arg4[%c0_14, %c0_15, %30] : memref<1x48x2432xbf16, #tpu.memory_space<vmem>>, vector<1x48x1152xbf16>
    %32 = vector.shape_cast %31 : vector<1x48x1152xbf16> to vector<48x1152xbf16>
    %33 = vector.extract_strided_slice %32 {offsets = [0, 0], sizes = [48, 1024], strides = [1, 1]} : vector<48x1152xbf16> to vector<48x1024xbf16>
    %c288 = arith.constant 288 : index
    %c0_16 = arith.constant 0 : index
    %34 = vector.load %arg7[%c288, %c0_16] : memref<432x1024xbf16, #tpu.memory_space<vmem>>, vector<48x1024xbf16>
    tpu.vector_store %arg7[%c288, %c0_16], %33 {strides = array<i32>} : memref<432x1024xbf16, #tpu.memory_space<vmem>>, vector<48x1024xbf16>,
    %35 = vector.extract_strided_slice %32 {offsets = [0, 1], sizes = [48, 1024], strides = [1, 1]} : vector<48x1152xbf16> to vector<48x1024xbf16>
    %c336 = arith.constant 336 : index
    %c0_17 = arith.constant 0 : index
    %36 = vector.load %arg7[%c336, %c0_17] : memref<432x1024xbf16, #tpu.memory_space<vmem>>, vector<48x1024xbf16>
    tpu.vector_store %arg7[%c336, %c0_17], %35 {strides = array<i32>} : memref<432x1024xbf16, #tpu.memory_space<vmem>>, vector<48x1024xbf16>,
    %37 = vector.extract_strided_slice %32 {offsets = [0, 2], sizes = [48, 1024], strides = [1, 1]} : vector<48x1152xbf16> to vector<48x1024xbf16>
    %c384 = arith.constant 384 : index
    %c0_18 = arith.constant 0 : index
    %38 = vector.load %arg7[%c384, %c0_18] : memref<432x1024xbf16, #tpu.memory_space<vmem>>, vector<48x1024xbf16>
    tpu.vector_store %arg7[%c384, %c0_18], %37 {strides = array<i32>} : memref<432x1024xbf16, #tpu.memory_space<vmem>>, vector<48x1024xbf16>,
    %c0_19 = arith.constant 0 : index
    %c0_20 = arith.constant 0 : index
    %39 = vector.load %arg2[%c0_19, %c0_20] : memref<96x432xbf16, #tpu.memory_space<vmem>>, vector<96x432xbf16>
    %c0_21 = arith.constant 0 : index
    %c0_22 = arith.constant 0 : index
    %40 = vector.load %arg7[%c0_21, %c0_22] : memref<432x1024xbf16, #tpu.memory_space<vmem>>, vector<432x1024xbf16>
    %cst = arith.constant dense<0.000000e+00> : vector<96x1024xf32>
    %41 = tpu.matmul %39, %40, %cst {dimension_numbers = #tpu.dot_dimension_numbers<[1], [0], [0], [1], [0, 0, 1, 1], [], []>} : vector<96x432xbf16>, vector<432x1024xbf16>, vector<96x1024xf32> -> vector<96x1024xf32>
    %c0_23 = arith.constant 0 : index
    %c0_24 = arith.constant 0 : index
    %42 = vector.load %arg3[%c0_23, %c0_24] : memref<96x1xf32, #tpu.memory_space<vmem>>, vector<96x1xf32>
    %43 = vector.broadcast %42 : vector<96x1xf32> to vector<96x1024xf32>
    %44 = arith.addf %41, %43 : vector<96x1024xf32>
    %45 = vector.extract_strided_slice %44 {offsets = [0, 0], sizes = [32, 1024], strides = [1, 1]} : vector<96x1024xf32> to vector<32x1024xf32>
    %46 = math.tanh %45 : vector<32x1024xf32>
    %47 = vector.extract_strided_slice %44 {offsets = [32, 0], sizes = [32, 1024], strides = [1, 1]} : vector<96x1024xf32> to vector<32x1024xf32>
    %cst_25 = arith.constant 5.000000e-01 : f32
    %48 = vector.broadcast %cst_25 : f32 to vector<32x1024xf32>
    %49 = arith.mulf %48, %47 : vector<32x1024xf32>
    %50 = math.tanh %49 : vector<32x1024xf32>
    %cst_26 = arith.constant 5.000000e-01 : f32
    %51 = vector.broadcast %cst_26 : f32 to vector<32x1024xf32>
    %52 = arith.mulf %51, %50 : vector<32x1024xf32>
    %cst_27 = arith.constant 5.000000e-01 : f32
    %53 = vector.broadcast %cst_27 : f32 to vector<32x1024xf32>
    %54 = arith.addf %52, %53 : vector<32x1024xf32>
    %55 = vector.extract_strided_slice %44 {offsets = [64, 0], sizes = [32, 1024], strides = [1, 1]} : vector<96x1024xf32> to vector<32x1024xf32>
    %cst_28 = arith.constant 5.000000e-01 : f32
    %56 = vector.broadcast %cst_28 : f32 to vector<32x1024xf32>
    %57 = arith.mulf %56, %55 : vector<32x1024xf32>
    %58 = math.tanh %57 : vector<32x1024xf32>
    %cst_29 = arith.constant 5.000000e-01 : f32
    %59 = vector.broadcast %cst_29 : f32 to vector<32x1024xf32>
    %60 = arith.mulf %59, %58 : vector<32x1024xf32>
    %cst_30 = arith.constant 5.000000e-01 : f32
    %61 = vector.broadcast %cst_30 : f32 to vector<32x1024xf32>
    %62 = arith.addf %60, %61 : vector<32x1024xf32>
    %63 = arith.mulf %46, %54 : vector<32x1024xf32>
    %64 = math.tanh %63 : vector<32x1024xf32>
    %65 = arith.mulf %62, %64 : vector<32x1024xf32>
    %66 = arith.truncf %64 : vector<32x1024xf32> to vector<32x1024xbf16>
    %c0_31 = arith.constant 0 : index
    %c0_32 = arith.constant 0 : index
    %c0_33 = arith.constant 0 : index
    %67 = vector.load %arg5[%c0_31, %c0_32, %c0_33] : memref<1x32x1024xbf16, #tpu.memory_space<vmem>>, vector<1x32x1024xbf16>
    %68 = vector.shape_cast %67 : vector<1x32x1024xbf16> to vector<32x1024xbf16>
    %69 = vector.shape_cast %66 : vector<32x1024xbf16> to vector<1x32x1024xbf16>
    tpu.vector_store %arg5[%c0_31, %c0_32, %c0_33], %69 {strides = array<i32>} : memref<1x32x1024xbf16, #tpu.memory_space<vmem>>, vector<1x32x1024xbf16>,
    %70 = arith.truncf %65 : vector<32x1024xf32> to vector<32x1024xbf16>
    %c0_34 = arith.constant 0 : index
    %c0_35 = arith.constant 0 : index
    %c0_36 = arith.constant 0 : index
    %71 = vector.load %arg6[%c0_34, %c0_35, %c0_36] : memref<1x32x1024xbf16, #tpu.memory_space<vmem>>, vector<1x32x1024xbf16>
    %72 = vector.shape_cast %71 : vector<1x32x1024xbf16> to vector<32x1024xbf16>
    %73 = vector.shape_cast %70 : vector<32x1024xbf16> to vector<1x32x1024xbf16>
    tpu.vector_store %arg6[%c0_34, %c0_35, %c0_36], %73 {strides = array<i32>} : memref<1x32x1024xbf16, #tpu.memory_space<vmem>>, vector<1x32x1024xbf16>,
    return
  }
  func.func @transform_0(%arg0: i32, %arg1: i32) -> (i32, i32) {
    %c0_i32 = arith.constant 0 : i32
    %c0_i32_0 = arith.constant 0 : i32
    %c0_i32_1 = arith.constant 0 : i32
    return %c0_i32, %c0_i32_0 : i32, i32
  }
  func.func @transform_1(%arg0: i32, %arg1: i32) -> (i32, i32) {
    %c0_i32 = arith.constant 0 : i32
    %c0_i32_0 = arith.constant 0 : i32
    %c0_i32_1 = arith.constant 0 : i32
    return %c0_i32, %c0_i32_0 : i32, i32
  }
  func.func @transform_2(%arg0: i32, %arg1: i32) -> (i32, i32, i32) {
    %c0_i32 = arith.constant 0 : i32
    %c0_i32_0 = arith.constant 0 : i32
    %c0_i32_1 = arith.constant 0 : i32
    return %arg0, %c0_i32, %c0_i32_0 : i32, i32, i32
  }
  func.func @transform_3(%arg0: i32, %arg1: i32) -> (i32, i32, i32) {
    %c0_i32 = arith.constant 0 : i32
    %c0_i32_0 = arith.constant 0 : i32
    return %arg0, %c0_i32, %arg1 : i32, i32, i32
  }
  func.func @transform_4(%arg0: i32, %arg1: i32) -> (i32, i32, i32) {
    %c0_i32 = arith.constant 0 : i32
    %c0_i32_0 = arith.constant 0 : i32
    return %arg0, %c0_i32, %arg1 : i32, i32, i32
  }
}

</mosaic_0001>

<bundles_post_ra>
// kernel: lstm0_forward.1
= control target key start
LH: loop header
LB: loop body
LE: loop exit
PB: predicated region body
PF: predicated region fallthrough
CT: control target
= control target key end

     0   :  { %s4559_s15 = smov 0   ;;  %s4561_s16 = smov 0   ;;  %s6212_s0 = inlined_call_operand.vmem [shape: bf16[96,432], index: 0, kind: input, shape index: {}]   ;;  %s6213_s1 = inlined_call_operand.vmem [shape: f32[96,1], index: 1, kind: input, shape index: {}]   ;;  %s6214_s2 = inlined_call_operand.vmem [shape: bf16[2,48,2432], index: 2, kind: input, shape index: {}]   ;;  %s6215_s3 = inlined_call_operand.vmem [shape: bf16[2,32,2048], index: 3, kind: output, shape index: {0}]   ;;  %s6216_s4 = inlined_call_operand.vmem [shape: bf16[2,32,2048], index: 4, kind: output, shape index: {1}]  }
   0x1   :  { %s4563_s17 = smov 0   ;;  %s4565_s18 = smov 0  }
   0x2   :  { %s4567_s19 = smov 0   ;;  %s4569_s20 = smov 0  }
   0x3   :  { %s4571_s21 = smov 0  }
   0x4 LB: > { %s24_s22 = sadd.s32 1, %s4521_s19  ;;  %s27_s23 = sadd.s32 1, %s4525_s20  ;;  %s4529_s21 = sphi %s4571_s21, %s15_s21   ;;  %s4525_s20 = sphi %s4569_s20, %s6237_s20   ;;  %s4521_s19 = sphi %s4567_s19, %s6236_s19   ;;  %s4517_s18 = sphi %s4565_s18, %s6235_s18   ;;  %s4513_s17 = sphi %s4563_s17, %s6234_s17   ;;  %s4509_s16 = sphi %s4561_s16, %s6233_s16   ;;  %s4505_s15 = sphi %s4559_s15, %s6232_s15  }
   0x5   : > { %p25_p0 = scmp.ge.s32.totalorder %s24_s22, 2  ;;  %s3578_s24 = sadd.s32 4294967295, %s4529_s21  }
   0x6   : > { %p114_p1 = scmp.ne.s32.totalorder %s4509_s16, %s4505_s15  ;;  %p115_p2 = scmp.eq.s32.totalorder %s3578_s24, 3 }
   0x7   : > { %s6239_s22 = smov (%p25_p0, %s24_s22), 0  ;;  %s6241_s23 = smov (!%p25_p0, %s27_s23), %s4525_s20 }
   0x8   : > { %s100_s25 = ssub.s32 %s4521_s19, %s6239_s22  ;;  %p29_p3 = scmp.ge.s32.totalorder %s6241_s23, 2 }
   0x9   : > { %p3582_p4 = scmp.ge.s32.totalorder %s4529_s21, 1  ;;  %p4605_p5 = por %p115_p2, %p114_p1 }
   0xa   : > { %p181_p6 = scmp.lt.s32.totalorder %s4529_s21, 5  ;;  %s6243_s23 = smov (%p29_p3, %s6241_s23), 0 }
   0xb   : > { %s99_s27 = ssub.s32 %s4525_s20, %s6243_s23  ;;  %s104_s29 = sadd.s32 1, %s4509_s16 }
   0xc   : > { %p182_p7 = pnand %p3582_p4, %p181_p6  ;;  %s101_s28 = sor.u32 %s100_s25, %s99_s27 }
   0xd   : > { %p102_p8 = scmp.eq.s32.totalorder %s101_s28, 0 }
   0xe   : > { %185 = sbr.rel (%p182_p7) target bundleno = 779 (0x30b), region = 32 }
   0xf   : > { %s4616_s30 = scalar_select %p102_p8, %s4509_s16, %s104_s29  }
  0x15   : > { %p210_p9 = scmp.lt.s32.totalorder %s4517_s18, 1  ;;  %s4620_s5 = sshll.u32 %s4513_s17, 10  ;;  %v4149_v30 = vld [vmem:[%s6212_s0 + $0x4] ss:$16 sps:$4 sm:$0xff]   ;;  %vm466_vm0 = vcmask 1039360   ;;  %vm593_vm1 = vcmask 1031168  }
  0x16   : > { %s219_s6 = sshra.s32 %s4620_s5, 7  ;;  %s3765_s14 = sadd.s32 128, %s4620_s5  ;;  %2224 = vmatprep.mubr.bf16.mxu1 %v4149_v30  ;;  %2038 = vmatprep.mubr.bf16.mxu0 %v4149_v30  ;;  %vm1987_vm2 = vcmask 392192  }
  0x17   : > { %s211_s7 = scalar_select %p210_p9, %s4517_s18, 1 }
  0x18   : > { %s3587_s9 = sshll.u32 %s219_s6, 2  ;;  %s4531_s24 = smov 127  }
  0x19   : > { %s3994_s8 = smul.u32 456, %s211_s7  ;;  %s669_s25 = sshra.s32 %s3765_s14, 7 }
  0x1a   : > { %s3617_s27 = sshll.u32 %s669_s25, 2  ;;  %s3767_s29 = sadd.s32 256, %s4620_s5 }
  0x1b   : > { %s4627_s12 = scalar_lea.vmem %s6214_s2, %s3994_s8  ;;  %s1116_s6 = sshra.s32 %s3767_s29, 7 }
  0x1c   : > { %s4630_s13 = scalar_lea.vmem %s4627_s12, %s3587_s9  ;;  %s4650_s28 = scalar_lea.vmem %s4627_s12, %s3617_s27 }
  0x1d   : > { %v4056_v0 = vld [vmem:[%s4630_s13 + $0xc] ss:$76 sps:$4 sm:$0xff]   ;;  %v4058_v1 = vld [vmem:[%s4630_s13 + $0x4] ss:$76 sps:$4 sm:$0xff]   ;;  %v4062_v3 = vld [vmem:[%s4630_s13 + $0x8] ss:$76 sps:$4 sm:$0xff]  }
  0x1e   : > { %418 = vrot.lane.b32.xlu1 %v4056_v0, %s4531_s24  ;;  %v4060_v2 = vld [vmem:[%s4630_s13 + $0x10] ss:$76 sps:$4 sm:$0xff]   ;;  %2192 = vmatprep.subr.bf16.mxu1 %v4056_v0  ;;  %v4065_v4 = vld [vmem:[%s4630_s13] ss:$76 sps:$4 sm:$0xff]   ;;  %v4069_v8 = vld [vmem:[%s4630_s13 + $0x98] ss:$76 sps:$4 sm:$0xff]  }
  0x1f   : > { %414 = vrot.lane.b32.xlu0 %v4058_v1, %s4531_s24  ;;  %2006 = vmatprep.subr.bf16.mxu0 %v4058_v1  ;;  %v4066_v5 = vld [vmem:[%s4630_s13 + $0xa4] ss:$76 sps:$4 sm:$0xff]   ;;  %v4063_v6 = vld [vmem:[%s4630_s13 + $0x9c] ss:$76 sps:$4 sm:$0xff]   ;;  %v4068_v7 = vld [vmem:[%s4630_s13 + $0xa0] ss:$76 sps:$4 sm:$0xff]  }
  0x20   : > { %2193 = vmatpush1.bf16.msra.mxu1 %v4062_v3  ;;  %2007 = vmatpush1.bf16.msra.mxu0 %v4065_v4  ;;  %v4074_v9 = vld [vmem:[%s4630_s13 + $0x134] ss:$76 sps:$4 sm:$0xff]   ;;  %v4079_v10 = vld [vmem:[%s4630_s13 + $0x13c] ss:$76 sps:$4 sm:$0xff]   ;;  %v4072_v11 = vld [vmem:[%s4630_s13 + $0x138] ss:$76 sps:$4 sm:$0xff]  }
  0x21   : > { %2194 = vmatprep.subr.bf16.mxu1 %v4066_v5  ;;  %2008 = vmatprep.subr.bf16.mxu0 %v4063_v6  ;;  %v4080_v12 = vld [vmem:[%s4630_s13 + $0x130] ss:$76 sps:$4 sm:$0xff]   ;;  %v4070_v13 = vld [vmem:[%s4630_s13 + $0xa8] ss:$76 sps:$4 sm:$0xff]   ;;  %s3646_s7 = sshll.u32 %s1116_s6, 2  ;;  %s4532_s5 = smov 126  }
  0x22   : > { %420 = vrot.lane.b32.xlu1 %v4060_v2, %s4531_s24  ;;  %v4076_v14 = vld [vmem:[%s4630_s13 + $0x140] ss:$76 sps:$4 sm:$0xff]   ;;  %s4664_s8 = scalar_lea.vmem %s4627_s12, %s3646_s7  ;;  %v4685_v15 = vld [vmem:[%s4650_s28 + $0x8] ss:$76 sps:$4 sm:$0xff]   ;;  %v4689_v16 = vld [vmem:[%s4650_s28 + $0x4] ss:$76 sps:$4 sm:$0xff]  }
  0x23   : > { %416 = vrot.lane.b32.xlu0 %v4062_v3, %s4531_s24  ;;  %v4085_v17 = vld [vmem:[%s4650_s28 + $0x10] ss:$76 sps:$4 sm:$0xff]   ;;  %v4697_v18 = vld [vmem:[%s4650_s28 + $0xc] ss:$76 sps:$4 sm:$0xff]   ;;  %v4096_v24 = vld [vmem:[%s4650_s28 + $0xa8] ss:$76 sps:$4 sm:$0xff]  }
  0x24   : > { %2195 = vmatpush1.bf16.msra.mxu1 %v4068_v7  ;;  %2009 = vmatpush1.bf16.msra.mxu0 %v4069_v8  ;;  %v4701_v19 = vld [vmem:[%s4650_s28 + $0x9c] ss:$76 sps:$4 sm:$0xff]   ;;  %v4706_v20 = vld [vmem:[%s4650_s28] ss:$76 sps:$4 sm:$0xff]   ;;  %v4711_v21 = vld [vmem:[%s4650_s28 + $0xa4] ss:$76 sps:$4 sm:$0xff]  }
  0x25   : > { %2010 = vmatprep.subr.bf16.mxu0 %v4074_v9  ;;  %2196 = vmatprep.subr.bf16.mxu1 %v4079_v10  ;;  %v4716_v22 = vld [vmem:[%s4650_s28 + $0xa0] ss:$76 sps:$4 sm:$0xff]   ;;  %v4721_v23 = vld [vmem:[%s4650_s28 + $0x98] ss:$76 sps:$4 sm:$0xff]   ;;  %v4741_v28 = vld [vmem:[%s4650_s28 + $0x13c] ss:$76 sps:$4 sm:$0xff]  }
  0x26   : > { %432 = vrot.lane.b32.xlu1 %v4063_v6, %s4531_s24  ;;  %v4729_v25 = vld [vmem:[%s4650_s28 + $0x138] ss:$76 sps:$4 sm:$0xff]   ;;  %v4733_v26 = vld [vmem:[%s4650_s28 + $0x134] ss:$76 sps:$4 sm:$0xff]   ;;  %v4747_v29 = vld [vmem:[%s4650_s28 + $0x130] ss:$76 sps:$4 sm:$0xff]  }
  0x27   : > { %412 = vrot.lane.b32.xlu0 %v4065_v4, %s4531_s24  ;;  %v4103_v27 = vld [vmem:[%s4650_s28 + $0x140] ss:$76 sps:$4 sm:$0xff]   ;;  %v4781_v33 = vld [vmem:[%s4664_s8 + $0x8] ss:$76 sps:$4 sm:$0xff]   ;;  %v4785_v34 = vld [vmem:[%s4664_s8 + $0x4] ss:$76 sps:$4 sm:$0xff]  }
  0x28   : > { %2197 = vmatpush1.bf16.msra.mxu1 %v4072_v11  ;;  %2011 = vmatpush1.bf16.msra.mxu0 %v4080_v12  ;;  %v4796_v40 = vld [vmem:[%s4664_s8 + $0x10] ss:$76 sps:$4 sm:$0xff]   ;;  %v4801_v41 = vld [vmem:[%s4664_s8 + $0xc] ss:$76 sps:$4 sm:$0xff]   ;;  %v4123_v58 = vld [vmem:[%s4664_s8 + $0xa8] ss:$76 sps:$4 sm:$0xff]  }
  0x29   : > { %v4807_v45 = vld [vmem:[%s4664_s8 + $0x9c] ss:$76 sps:$4 sm:$0xff]   ;;  %v4812_v46 = vld [vmem:[%s4664_s8] ss:$76 sps:$4 sm:$0xff]   ;;  %v4818_v50 = vld [vmem:[%s4664_s8 + $0xa4] ss:$76 sps:$4 sm:$0xff]  }
  0x2a   : > { %436 = vrot.lane.b32.xlu1 %v4066_v5, %s4531_s24  ;;  %v4823_v51 = vld [vmem:[%s4664_s8 + $0xa0] ss:$76 sps:$4 sm:$0xff]   ;;  %v4833_v56 = vld [vmem:[%s4664_s8 + $0x98] ss:$76 sps:$4 sm:$0xff]   ;;  %s3756_s14 = sshll.u32 (%p4605_p5), %s4513_s17, 3  ;;  %s3757_s25 = sshll.u32 (%p4605_p5), %s4517_s18, 6 }
  0x2b   : > { %434 = vrot.lane.b32.xlu0 %v4068_v7, %s4531_s24  ;;  %v4843_v62 = vld [vmem:[%s4664_s8 + $0x138] ss:$76 sps:$4 sm:$0xff]   ;;  %v4847_v63 = vld [vmem:[%s4664_s8 + $0x134] ss:$76 sps:$4 sm:$0xff]   ;;  %s3371_s27 = sadd.s32 (%p4605_p5), %s3757_s25, %s3756_s14 }
  0x2c   : > { %s3758_s29 = sshll.u32 (%p4605_p5), %s3371_s27, 2 }
  0x2d   : > { %s3373_s9 = scalar_lea.vmem (%p4605_p5), %s6215_s3, %s3758_s29 }
  0x2e   : > { %430 = vrot.lane.b32.xlu1 %v4069_v8, %s4531_s24 }
  0x2f   : > { %438 = vrot.lane.b32.xlu0 %v4070_v13, %s4531_s24 }
  0x32   : > { %452 = vrot.lane.b32.xlu1 %v4072_v11, %s4531_s24 }
  0x33   : > { %450 = vrot.lane.b32.xlu0 %v4074_v9, %s4531_s24 }
  0x36   : > { %456 = vrot.lane.b32.xlu1 %v4076_v14, %s4531_s24 }
  0x37   : > { %454 = vrot.lane.b32.xlu0 %v4079_v10, %s4531_s24 }
  0x3a   : > { %541 = vrot.lane.b32.xlu1 %v4058_v1, %s4532_s5 }
  0x3b   : > { %448 = vrot.lane.b32.xlu0 %v4080_v12, %s4531_s24 }
  0x3e   : > { %545 = vrot.lane.b32.xlu1 %v4056_v0, %s4532_s5 }
  0x3f   : > { %543 = vrot.lane.b32.xlu0 %v4062_v3, %s4532_s5 }
  0x42   : > { %539 = vrot.lane.b32.xlu1 %v4065_v4, %s4532_s5  ;;  %v4857_v4 = vld [vmem:[%s4664_s8 + $0x140] ss:$76 sps:$4 sm:$0xff]  }
  0x43   : > { %547 = vrot.lane.b32.xlu0 %v4060_v2, %s4532_s5 }
  0x46   : > { %561 = vrot.lane.b32.xlu1 %v4068_v7, %s4532_s5 }
  0x47   : > { %559 = vrot.lane.b32.xlu0 %v4063_v6, %s4532_s5 }
  0x4a   : > { %565 = vrot.lane.b32.xlu1 %v4070_v13, %s4532_s5 }
  0x4b   : > { %563 = vrot.lane.b32.xlu0 %v4066_v5, %s4532_s5  ;;  %v4862_v5 = vld [vmem:[%s4664_s8 + $0x13c] ss:$76 sps:$4 sm:$0xff]  }
  0x4e   : > { %577 = vrot.lane.b32.xlu1 %v4074_v9, %s4532_s5  ;;  %v4870_v9 = vld [vmem:[%s4664_s8 + $0x130] ss:$76 sps:$4 sm:$0xff]  }
  0x4f   : > { %557 = vrot.lane.b32.xlu0 %v4069_v8, %s4532_s5 }
  0x52   : > { %581 = vrot.lane.b32.xlu1 %v4079_v10, %s4532_s5 }
  0x53   : > { %579 = vrot.lane.b32.xlu0 %v4072_v11, %s4532_s5 }
  0x56   : > { %575 = vrot.lane.b32.xlu1 %v4080_v12, %s4532_s5 }
  0x57   : > { %583 = vrot.lane.b32.xlu0 %v4076_v14, %s4532_s5 }
  0x5a   : > { %866 = vrot.lane.b32.xlu1 %v4685_v15, %s4531_s24 }
  0x5b   : > { %864 = vrot.lane.b32.xlu0 %v4689_v16, %s4531_s24 }
  0x5e   : > { %870 = vrot.lane.b32.xlu1 %v4085_v17, %s4531_s24 }
  0x5f   : > { %868 = vrot.lane.b32.xlu0 %v4697_v18, %s4531_s24 }
  0x62   : > { %882 = vrot.lane.b32.xlu1 %v4701_v19, %s4531_s24 }
  0x63   : > { %862 = vrot.lane.b32.xlu0 %v4706_v20, %s4531_s24 }
  0x66   : > { %886 = vrot.lane.b32.xlu1 %v4711_v21, %s4531_s24 }
  0x67   : > { %884 = vrot.lane.b32.xlu0 %v4716_v22, %s4531_s24 }
  0x6a   : > { %880 = vrot.lane.b32.xlu1 %v4721_v23, %s4531_s24 }
  0x6b   : > { %888 = vrot.lane.b32.xlu0 %v4096_v24, %s4531_s24 }
  0x6e   : > { %902 = vrot.lane.b32.xlu1 %v4729_v25, %s4531_s24 }
  0x6f   : > { %900 = vrot.lane.b32.xlu0 %v4733_v26, %s4531_s24 }
  0x72   : > { %906 = vrot.lane.b32.xlu1 %v4103_v27, %s4531_s24 }
  0x73   : > { %904 = vrot.lane.b32.xlu0 %v4741_v28, %s4531_s24 }
  0x76   : > { %990 = vrot.lane.b32.xlu1 %v4689_v16, %s4532_s5 }
  0x77   : > { %898 = vrot.lane.b32.xlu0 %v4747_v29, %s4531_s24 }
  0x7a   : > { %994 = vrot.lane.b32.xlu1 %v4697_v18, %s4532_s5 }
  0x7b   : > { %992 = vrot.lane.b32.xlu0 %v4685_v15, %s4532_s5 }
  0x7e   : > { %988 = vrot.lane.b32.xlu1 %v4706_v20, %s4532_s5 }
  0x7f   : > { %996 = vrot.lane.b32.xlu0 %v4085_v17, %s4532_s5 }
  0x82   : > { %1010 = vrot.lane.b32.xlu1 %v4716_v22, %s4532_s5 }
  0x83   : > { %1008 = vrot.lane.b32.xlu0 %v4701_v19, %s4532_s5 }
  0x86   : > { %1014 = vrot.lane.b32.xlu1 %v4096_v24, %s4532_s5 }
  0x87   : > { %1012 = vrot.lane.b32.xlu0 %v4711_v21, %s4532_s5 }
  0x8a   : > { %1026 = vrot.lane.b32.xlu1 %v4733_v26, %s4532_s5 }
  0x8b   : > { %1006 = vrot.lane.b32.xlu0 %v4721_v23, %s4532_s5 }
  0x8e   : > { %1030 = vrot.lane.b32.xlu1 %v4741_v28, %s4532_s5 }
  0x8f   : > { %1028 = vrot.lane.b32.xlu0 %v4729_v25, %s4532_s5 }
  0x90   : > { %v419_v31 = vpop.permute.xlu1 %418 }
  0x91   : > { %v415_v32 = vpop.permute.xlu0 %414 }
  0x92   : > { %1024 = vrot.lane.b32.xlu1 %v4747_v29, %s4532_s5 }
  0x93   : > { %1032 = vrot.lane.b32.xlu0 %v4103_v27, %s4532_s5 }
  0x94   : > { %v4787_v35 = vpop.permute.xlu1 %420 }
  0x95   : > { %v417_v36 = vpop.permute.xlu0 %416  ;;  %v470_v37 = vsel %vm466_vm0, %v419_v31, %v4787_v35 }
  0x96   : > { %2198 = vmatprep.subr.bf16.mxu1 %v470_v37  ;;  %1313 = vrot.lane.b32.xlu1 %v4781_v33, %s4531_s24  ;;  %v468_v38 = vsel %vm466_vm0, %v415_v32, %v417_v36  ;;  %v469_v39 = vsel %vm466_vm0, %v417_v36, %v419_v31 }
  0x97   : > { %1311 = vrot.lane.b32.xlu0 %v4785_v34, %s4531_s24  ;;  %2012 = vmatprep.subr.bf16.mxu0 %v468_v38 }
  0x98   : > { %2199 = vmatpush1.bf16.msra.mxu1 %v469_v39  ;;  %v433_v42 = vpop.permute.xlu1 %432 }
  0x99   : > { %v413_v43 = vpop.permute.xlu0 %412 }
  0x9a   : > { %1317 = vrot.lane.b32.xlu1 %v4796_v40, %s4531_s24  ;;  %v467_v44 = vsel %vm466_vm0, %v413_v43, %v415_v32 }
  0x9b   : > { %1315 = vrot.lane.b32.xlu0 %v4801_v41, %s4531_s24  ;;  %2013 = vmatpush1.bf16.msra.mxu0 %v467_v44 }
  0x9c   : > { %v437_v47 = vpop.permute.xlu1 %436 }
  0x9d   : > { %v435_v48 = vpop.permute.xlu0 %434 }
  0x9e   : > { %1329 = vrot.lane.b32.xlu1 %v4807_v45, %s4531_s24  ;;  %v476_v49 = vsel %vm466_vm0, %v433_v42, %v435_v48  ;;  %v477_v57 = vsel %vm466_vm0, %v435_v48, %v437_v47 }
  0x9f   : > { %1309 = vrot.lane.b32.xlu0 %v4812_v46, %s4531_s24  ;;  %2014 = vmatprep.subr.bf16.mxu0 %v476_v49 }
  0xa0   : > { %v431_v52 = vpop.permute.xlu1 %430 }
  0xa1   : > { %v4825_v53 = vpop.permute.xlu0 %438  ;;  %v475_v54 = vsel %vm466_vm0, %v431_v52, %v433_v42 }
  0xa2   : > { %1333 = vrot.lane.b32.xlu1 %v4818_v50, %s4531_s24  ;;  %2015 = vmatpush1.bf16.msra.mxu0 %v475_v54  ;;  %v478_v55 = vsel %vm466_vm0, %v437_v47, %v4825_v53 }
  0xa3   : > { %1331 = vrot.lane.b32.xlu0 %v4823_v51, %s4531_s24  ;;  %2200 = vmatprep.subr.bf16.mxu1 %v478_v55 }
  0xa4   : > { %2201 = vmatpush1.bf16.msra.mxu1 %v477_v57  ;;  %v453_v59 = vpop.permute.xlu1 %452 }
  0xa5   : > { %v451_v60 = vpop.permute.xlu0 %450 }
  0xa6   : > { %1327 = vrot.lane.b32.xlu1 %v4833_v56, %s4531_s24  ;;  %v484_v61 = vsel %vm466_vm0, %v451_v60, %v453_v59 }
  0xa7   : > { %1335 = vrot.lane.b32.xlu0 %v4123_v58, %s4531_s24  ;;  %2016 = vmatprep.subr.bf16.mxu0 %v484_v61  ;;  %v4932_v61 = vld [vmem:[%s4630_s13 + $0x14] ss:$76 sps:$4 sm:$0xff]  }
  0xa8   : > { %v4849_v0 = vpop.permute.xlu1 %456 }
  0xa9   : > { %v455_v1 = vpop.permute.xlu0 %454 }
  0xaa   : > { %1349 = vrot.lane.b32.xlu1 %v4843_v62, %s4531_s24  ;;  %v486_v2 = vsel %vm466_vm0, %v455_v1, %v4849_v0  ;;  %v485_v3 = vsel %vm466_vm0, %v453_v59, %v455_v1 }
  0xab   : > { %1347 = vrot.lane.b32.xlu0 %v4847_v63, %s4531_s24  ;;  %2202 = vmatprep.subr.bf16.mxu1 %v486_v2 }
  0xac   : > { %2203 = vmatpush1.bf16.msra.mxu1 %v485_v3  ;;  %v542_v6 = vpop.permute.xlu1 %541 }
  0xad   : > { %v449_v7 = vpop.permute.xlu0 %448 }
  0xae   : > { %1353 = vrot.lane.b32.xlu1 %v4857_v4, %s4531_s24  ;;  %v483_v8 = vsel %vm466_vm0, %v449_v7, %v451_v60  ;;  %v4926_v60 = vld [vmem:[%s4630_s13 + $0x18] ss:$76 sps:$4 sm:$0xff]  }
  0xaf   : > { %1351 = vrot.lane.b32.xlu0 %v4862_v5, %s4531_s24  ;;  %2017 = vmatpush1.bf16.msra.mxu0 %v483_v8 }
  0xb0   : > { %v546_v10 = vpop.permute.xlu1 %545 }
  0xb1   : > { %v544_v11 = vpop.permute.xlu0 %543 }
  0xb2   : > { %1437 = vrot.lane.b32.xlu1 %v4785_v34, %s4532_s5  ;;  %v595_v12 = vsel %vm593_vm1, %v542_v6, %v544_v11  ;;  %v596_v27 = vsel %vm593_vm1, %v544_v11, %v546_v10 }
  0xb3   : > { %1345 = vrot.lane.b32.xlu0 %v4870_v9, %s4531_s24  ;;  %2018 = vmatprep.subr.bf16.mxu0 %v595_v12  ;;  %v4985_v12 = vld [vmem:[%s4630_s13 + $0x148] ss:$76 sps:$4 sm:$0xff]  }
  0xb4   : > { %v540_v13 = vpop.permute.xlu1 %539 }
  0xb5   : > { %v4877_v14 = vpop.permute.xlu0 %547  ;;  %v594_v17 = vsel %vm593_vm1, %v540_v13, %v542_v6  ;;  %v4976_v6 = vld [vmem:[%s4630_s13 + $0xb4] ss:$76 sps:$4 sm:$0xff]   ;;  %v4988_v13 = vld [vmem:[%s4630_s13 + $0x144] ss:$76 sps:$4 sm:$0xff]  }
  0xb6   : > { %1441 = vrot.lane.b32.xlu1 %v4801_v41, %s4532_s5  ;;  %2019 = vmatpush1.bf16.msra.mxu0 %v594_v17  ;;  %v597_v24 = vsel %vm593_vm1, %v546_v10, %v4877_v14 }
  0xb7   : > { %1439 = vrot.lane.b32.xlu0 %v4781_v33, %s4532_s5  ;;  %2204 = vmatprep.subr.bf16.mxu1 %v597_v24 }
  0xb8   : > { %2205 = vmatpush1.bf16.msra.mxu1 %v596_v27  ;;  %v562_v30 = vpop.permute.xlu1 %561 }
  0xb9   : > { %v560_v31 = vpop.permute.xlu0 %559 }
  0xba   : > { %1435 = vrot.lane.b32.xlu1 %v4812_v46, %s4532_s5  ;;  %v603_v32 = vsel %vm593_vm1, %v560_v31, %v562_v30 }
  0xbb   : > { %1443 = vrot.lane.b32.xlu0 %v4796_v40, %s4532_s5  ;;  %2020 = vmatprep.subr.bf16.mxu0 %v603_v32  ;;  %v5000_v32 = vld [vmem:[%s4630_s13 + $0x14c] ss:$76 sps:$4 sm:$0xff]  }
  0xbc   : > { %v4892_v36 = vpop.permute.xlu1 %565 }
  0xbd   : > { %v564_v37 = vpop.permute.xlu0 %563 }
  0xbe   : > { %1457 = vrot.lane.b32.xlu1 %v4823_v51, %s4532_s5  ;;  %v605_v38 = vsel %vm593_vm1, %v564_v37, %v4892_v36  ;;  %v604_v39 = vsel %vm593_vm1, %v562_v30, %v564_v37 }
  0xbf   : > { %1455 = vrot.lane.b32.xlu0 %v4807_v45, %s4532_s5  ;;  %2206 = vmatprep.subr.bf16.mxu1 %v605_v38 }
  0xc0   : > { %2207 = vmatpush1.bf16.msra.mxu1 %v604_v39  ;;  %v578_v42 = vpop.permute.xlu1 %577 }
  0xc1   : > { %v558_v43 = vpop.permute.xlu0 %557 }
  0xc2   : > { %1461 = vrot.lane.b32.xlu1 %v4123_v58, %s4532_s5  ;;  %v602_v40 = vsel %vm593_vm1, %v558_v43, %v560_v31  ;;  %v4147_v31 = vld [vmem:[%s4630_s13 + $0x150] ss:$76 sps:$4 sm:$0xff]  }
  0xc3   : > { %1459 = vrot.lane.b32.xlu0 %v4818_v50, %s4532_s5  ;;  %2021 = vmatpush1.bf16.msra.mxu0 %v602_v40 }
  0xc4   : > { %v582_v44 = vpop.permute.xlu1 %581 }
  0xc5   : > { %v580_v47 = vpop.permute.xlu0 %579 }
  0xc6   : > { %1473 = vrot.lane.b32.xlu1 %v4847_v63, %s4532_s5  ;;  %v611_v48 = vsel %vm593_vm1, %v578_v42, %v580_v47  ;;  %v612_v57 = vsel %vm593_vm1, %v580_v47, %v582_v44 }
  0xc7   : > { %1453 = vrot.lane.b32.xlu0 %v4833_v56, %s4532_s5  ;;  %2022 = vmatprep.subr.bf16.mxu0 %v611_v48 }
  0xc8   : > { %v576_v49 = vpop.permute.xlu1 %575 }
  0xc9   : > { %v4910_v52 = vpop.permute.xlu0 %583  ;;  %v610_v54 = vsel %vm593_vm1, %v576_v49, %v578_v42 }
  0xca   : > { %1477 = vrot.lane.b32.xlu1 %v4862_v5, %s4532_s5  ;;  %2023 = vmatpush1.bf16.msra.mxu0 %v610_v54  ;;  %v613_v55 = vsel %vm593_vm1, %v582_v44, %v4910_v52 }
  0xcb   : > { %1475 = vrot.lane.b32.xlu0 %v4843_v62, %s4532_s5  ;;  %2208 = vmatprep.subr.bf16.mxu1 %v613_v55 }
  0xcc   : > { %2209 = vmatpush1.bf16.msra.mxu1 %v612_v57  ;;  %v867_v58 = vpop.permute.xlu1 %866  ;;  %2024 = vmatprep.subr.bf16.mxu0 %v4689_v16 }
  0xcd   : > { %v865_v59 = vpop.permute.xlu0 %864  ;;  %2210 = vmatprep.subr.bf16.mxu1 %v4697_v18 }
  0xce   : > { %1471 = vrot.lane.b32.xlu1 %v4870_v9, %s4532_s5  ;;  %2025 = vmatpush1.bf16.msra.mxu0 %v4706_v20  ;;  %v4942_v20 = vld [vmem:[%s4630_s13 + $0x20] ss:$76 sps:$4 sm:$0xff]  }
  0xcf   : > { %1479 = vrot.lane.b32.xlu0 %v4857_v4, %s4532_s5  ;;  %2026 = vmatprep.subr.bf16.mxu0 %v4701_v19  ;;  %v4143_v4 = vld [vmem:[%s4630_s13 + $0xb8] ss:$76 sps:$4 sm:$0xff]  }
  0xd0   : > { %2211 = vmatpush1.bf16.msra.mxu1 %v4685_v15  ;;  %v4935_v16 = vpop.permute.xlu1 %870  ;;  %v4948_v15 = vld [vmem:[%s4630_s13 + $0x1c] ss:$76 sps:$4 sm:$0xff]  }
  0xd1   : > { %v869_v18 = vpop.permute.xlu0 %868  ;;  %2212 = vmatprep.subr.bf16.mxu1 %v4711_v21  ;;  %v917_v21 = vsel %vm466_vm0, %v865_v59, %v867_v58 }
  0xd2   : > { %424 = vrot.lane.b32.xlu1 %v4926_v60, %s4531_s24  ;;  %2027 = vmatpush1.bf16.msra.mxu0 %v4721_v23  ;;  %v4957_v23 = vld [vmem:[%s4630_s13 + $0xb0] ss:$76 sps:$4 sm:$0xff]  }
  0xd3   : > { %422 = vrot.lane.b32.xlu0 %v4932_v61, %s4531_s24  ;;  %2028 = vmatprep.subr.bf16.mxu0 %v4733_v26 }
  0xd4   : > { %2213 = vmatpush1.bf16.msra.mxu1 %v4716_v22  ;;  %v883_v19 = vpop.permute.xlu1 %882  ;;  %v4962_v22 = vld [vmem:[%s4630_s13 + $0xac] ss:$76 sps:$4 sm:$0xff]  }
  0xd5   : > { %v863_v1 = vpop.permute.xlu0 %862  ;;  %2214 = vmatprep.subr.bf16.mxu1 %v4741_v28  ;;  %v919_v28 = vsel %vm466_vm0, %v869_v18, %v4935_v16 }
  0xd6   : > { %428 = vrot.lane.b32.xlu1 %v4942_v20, %s4531_s24  ;;  %2029 = vmatpush1.bf16.msra.mxu0 %v4747_v29  ;;  %v916_v29 = vsel %vm466_vm0, %v863_v1, %v865_v59  ;;  %v5030_v59 = vld [vmem:[%s6212_s0 + $0x24] ss:$16 sps:$4 sm:$0xff]  }
  0xd7   : > { %426 = vrot.lane.b32.xlu0 %v4948_v15, %s4531_s24  ;;  %2030 = vmatprep.subr.bf16.mxu0 %v917_v21 }
  0xd8   : > { %2215 = vmatpush1.bf16.msra.mxu1 %v4729_v25  ;;  %v887_v26 = vpop.permute.xlu1 %886  ;;  %v918_v25 = vsel %vm466_vm0, %v867_v58, %v869_v18 }
  0xd9   : > { %2216 = vmatprep.subr.bf16.mxu1 %v919_v28  ;;  %v885_v2 = vpop.permute.xlu0 %884 }
  0xda   : > { %442 = vrot.lane.b32.xlu1 %v4957_v23, %s4531_s24  ;;  %2031 = vmatpush1.bf16.msra.mxu0 %v916_v29  ;;  %v925_v3 = vsel %vm466_vm0, %v883_v19, %v885_v2  ;;  %v926_v17 = vsel %vm466_vm0, %v885_v2, %v887_v26  ;;  %v5052_v2 = vld [vmem:[%s6212_s0 + $0x20] ss:$16 sps:$4 sm:$0xff]  }
  0xdb   : > { %440 = vrot.lane.b32.xlu0 %v4962_v22, %s4531_s24  ;;  %2032 = vmatprep.subr.bf16.mxu0 %v925_v3 }
  0xdc   : > { %2217 = vmatpush1.bf16.msra.mxu1 %v918_v25  ;;  %v881_v7 = vpop.permute.xlu1 %880 }
  0xdd   : > { %v4978_v8 = vpop.permute.xlu0 %888  ;;  %v924_v10 = vsel %vm466_vm0, %v881_v7, %v883_v19 }
  0xde   : > { %446 = vrot.lane.b32.xlu1 %v4143_v4, %s4531_s24  ;;  %2033 = vmatpush1.bf16.msra.mxu0 %v924_v10  ;;  %v927_v11 = vsel %vm466_vm0, %v887_v26, %v4978_v8 }
  0xdf   : > { %444 = vrot.lane.b32.xlu0 %v4976_v6, %s4531_s24  ;;  %2218 = vmatprep.subr.bf16.mxu1 %v927_v11  ;;  %v5071_v11 = vld [vmem:[%s4650_s28 + $0x18] ss:$76 sps:$4 sm:$0xff]  }
  0xe0   : > { %2219 = vmatpush1.bf16.msra.mxu1 %v926_v17  ;;  %v903_v24 = vpop.permute.xlu1 %902  ;;  %v5075_v17 = vld [vmem:[%s4650_s28 + $0x14] ss:$76 sps:$4 sm:$0xff]  }
  0xe1   : > { %v901_v27 = vpop.permute.xlu0 %900 }
  0xe2   : > { %460 = vrot.lane.b32.xlu1 %v4985_v12, %s4531_s24  ;;  %v933_v30 = vsel %vm466_vm0, %v901_v27, %v903_v24 }
  0xe3   : > { %458 = vrot.lane.b32.xlu0 %v4988_v13, %s4531_s24  ;;  %2034 = vmatprep.subr.bf16.mxu0 %v933_v30  ;;  %v5083_v30 = vld [vmem:[%s6212_s0 + $0x40] ss:$16 sps:$4 sm:$0xff]  }
  0xe4   : > { %v5002_v37 = vpop.permute.xlu1 %906 }
  0xe5   : > { %v905_v38 = vpop.permute.xlu0 %904 }
  0xe6   : > { %464 = vrot.lane.b32.xlu1 %v4147_v31, %s4531_s24  ;;  %v935_v39 = vsel %vm466_vm0, %v905_v38, %v5002_v37  ;;  %v934_v42 = vsel %vm466_vm0, %v903_v24, %v905_v38  ;;  %v5090_v38 = vld [vmem:[%s4650_s28 + $0x20] ss:$76 sps:$4 sm:$0xff]  }
  0xe7   : > { %462 = vrot.lane.b32.xlu0 %v5000_v32, %s4531_s24  ;;  %2220 = vmatprep.subr.bf16.mxu1 %v935_v39  ;;  %v5095_v39 = vld [vmem:[%s4650_s28 + $0x1c] ss:$76 sps:$4 sm:$0xff]  }
  0xe8   : > { %2221 = vmatpush1.bf16.msra.mxu1 %v934_v42  ;;  %v991_v43 = vpop.permute.xlu1 %990 }
  0xe9   : > { %v899_v40 = vpop.permute.xlu0 %898 }
  0xea   : > { %551 = vrot.lane.b32.xlu1 %v4926_v60, %s4532_s5  ;;  %v932_v44 = vsel %vm466_vm0, %v899_v40, %v901_v27 }
  0xeb   : > { %549 = vrot.lane.b32.xlu0 %v4932_v61, %s4532_s5  ;;  %2035 = vmatpush1.bf16.msra.mxu0 %v932_v44 }
  0xec   : > { %v995_v47 = vpop.permute.xlu1 %994 }
  0xed   : > { %v993_v48 = vpop.permute.xlu0 %992 }
  0xee   : > { %555 = vrot.lane.b32.xlu1 %v4942_v20, %s4532_s5  ;;  %v1043_v49 = vsel %vm593_vm1, %v991_v43, %v993_v48  ;;  %v1044_v18 = vsel %vm593_vm1, %v993_v48, %v995_v47  ;;  %v5038_v20 = vld [vmem:[%s6212_s0] ss:$16 sps:$4 sm:$0xff]   ;;  %v5109_v48 = vld [vmem:[%s4650_s28 + $0xac] ss:$76 sps:$4 sm:$0xff]  }
  0xef   : > { %553 = vrot.lane.b32.xlu0 %v4948_v15, %s4532_s5  ;;  %2036 = vmatprep.subr.bf16.mxu0 %v1043_v49 }
  0xf0   : > { %v989_v54 = vpop.permute.xlu1 %988 }
  0xf1   : > { %v5020_v55 = vpop.permute.xlu0 %996  ;;  %v1042_v57 = vsel %vm593_vm1, %v989_v54, %v991_v43 }
  0xf2   : > { %569 = vrot.lane.b32.xlu1 %v4957_v23, %s4532_s5  ;;  %2037 = vmatpush1.bf16.msra.mxu0 %v1042_v57  ;;  %v1045_v58 = vsel %vm593_vm1, %v995_v47, %v5020_v55  ;;  %v5106_v47 = vld [vmem:[%s4650_s28 + $0xb0] ss:$76 sps:$4 sm:$0xff]   ;;  %v5118_v57 = vld [vmem:[%s6212_s0 + $0x64] ss:$16 sps:$4 sm:$0xff]  }
  0xf3   : > { %567 = vrot.lane.b32.xlu0 %v4962_v22, %s4532_s5  ;;  %2222 = vmatprep.subr.bf16.mxu1 %v1045_v58 }
  0xf4   : > { %2223 = vmatpush1.bf16.msra.mxu1 %v1044_v18  ;;  %v1011_v19 = vpop.permute.xlu1 %1010  ;;  %v5125_v18 = vld [vmem:[%s6212_s0 + $0x60] ss:$16 sps:$4 sm:$0xff]  }
  0xf5   : > { %v1009_v1 = vpop.permute.xlu0 %1008  ;;  %2039 = vmatmul.mubr.bf16.vlgmr.msra.gmra.mrb[0].mxu0 %v5038_v20 }
  0xf6   : > { %573 = vrot.lane.b32.xlu1 %v4143_v4, %s4532_s5  ;;  %v1051_v21 = vsel %vm593_vm1, %v1009_v1, %v1011_v19  ;;  %2048 = vmatprep.mubr.bf16.mxu0 %v5030_v59  ;;  %v5063_v4 = vld [vmem:[%s6212_s0 + $0x44] ss:$16 sps:$4 sm:$0xff]  }
  0xf7   : > { %571 = vrot.lane.b32.xlu0 %v4976_v6, %s4532_s5  ;;  %2099 = vmatprep.subr.bf16.mxu0 %v1051_v21  ;;  %v5169_v21 = vld [vmem:[%s6212_s0 + $0x80] ss:$16 sps:$4 sm:$0xff]  }
  0xf8   : > { %v5046_v26 = vpop.permute.xlu1 %1014  ;;  %2225 = vmatmul.mubr.bf16.vlgmr.msra.gmra.mrb[0].mxu1 %v5038_v20 }
  0xf9   : > { %v1013_v28 = vpop.permute.xlu0 %1012  ;;  %2234 = vmatprep.mubr.bf16.mxu1 %v5030_v59 }
  0xfa   : > { %587 = vrot.lane.b32.xlu1 %v4985_v12, %s4532_s5  ;;  %v1053_v29 = vsel %vm593_vm1, %v1013_v28, %v5046_v26  ;;  %v1052_v3 = vsel %vm593_vm1, %v1011_v19, %v1013_v28 }
  0xfb   : > { %585 = vrot.lane.b32.xlu0 %v4988_v13, %s4532_s5  ;;  %2285 = vmatprep.subr.bf16.mxu1 %v1053_v29 }
  0xfc   : > { %2286 = vmatpush1.bf16.msra.mxu1 %v1052_v3  ;;  %v1027_v25 = vpop.permute.xlu1 %1026 }
  0xfd   : > { %v1007_v7 = vpop.permute.xlu0 %1006  ;;  %2049 = vmatmul.mubr.bf16.gmra.mrb[4].mxu0 %v5052_v2 }
  0xfe   : > { %v1050_v10 = vsel %vm593_vm1, %v1007_v7, %v1009_v1  ;;  %591 = vrot.lane.b32.xlu1 %v4147_v31, %s4532_s5  ;;  %2058 = vmatprep.mubr.bf16.mxu0 %v5063_v4 }
  0xff   : > { %589 = vrot.lane.b32.xlu0 %v5000_v32, %s4532_s5  ;;  %2100 = vmatpush1.bf16.msra.mxu0 %v1050_v10 }
 0x100   : > { %v1031_v24 = vpop.permute.xlu1 %1030  ;;  %2235 = vmatmul.mubr.bf16.gmra.mrb[4].mxu1 %v5052_v2 }
 0x101   : > { %v1029_v27 = vpop.permute.xlu0 %1028  ;;  %2244 = vmatprep.mubr.bf16.mxu1 %v5063_v4 }
 0x102   : > { %874 = vrot.lane.b32.xlu1 %v5071_v11, %s4531_s24  ;;  %v1059_v31 = vsel %vm593_vm1, %v1027_v25, %v1029_v27  ;;  %v1060_v49 = vsel %vm593_vm1, %v1029_v27, %v1031_v24 }
 0x103   : > { %872 = vrot.lane.b32.xlu0 %v5075_v17, %s4531_s24  ;;  %2101 = vmatprep.subr.bf16.mxu0 %v1059_v31  ;;  %v5209_v31 = vld [vmem:[%s6212_s0 + $0xa0] ss:$16 sps:$4 sm:$0xff]  }
 0x104   : > { %v1025_v42 = vpop.permute.xlu1 %1024  ;;  %6224 = vst [vmem:[#allocation5_spill] sm:$0xff] %v5209_v31 }
 0x105   : > { %v1058_v43 = vsel %vm593_vm1, %v1025_v42, %v1027_v25  ;;  %v5098_v40 = vpop.permute.xlu0 %1032  ;;  %2059 = vmatmul.mubr.bf16.gmra.mrb[8].mxu0 %v5083_v30  ;;  %v5192_v25 = vld [vmem:[%s6212_s0 + $0xa4] ss:$16 sps:$4 sm:$0xff]  }
 0x106   : > { %878 = vrot.lane.b32.xlu1 %v5090_v38, %s4531_s24  ;;  %2102 = vmatpush1.bf16.msra.mxu0 %v1058_v43  ;;  %v1061_v44 = vsel %vm593_vm1, %v1031_v24, %v5098_v40  ;;  %v5218_v43 = vld [vmem:[%s6212_s0 + $0xc] ss:$16 sps:$4 sm:$0xff]  }
 0x107   : > { %876 = vrot.lane.b32.xlu0 %v5095_v39, %s4531_s24  ;;  %2287 = vmatprep.subr.bf16.mxu1 %v1061_v44  ;;  %6225 = vst [vmem:[#allocation6_spill] sm:$0xff] %v5218_v43 }
 0x108   : > { %2288 = vmatpush1.bf16.msra.mxu1 %v1060_v49  ;;  %v1314_v54 = vpop.permute.xlu1 %1313  ;;  %2103 = vmatprep.subr.bf16.mxu0 %v4785_v34  ;;  %v5131_v34 = vld [vmem:[%s4650_s28 + $0xb8] ss:$76 sps:$4 sm:$0xff]  }
 0x109   : > { %v1312_v58 = vpop.permute.xlu0 %1311  ;;  %2289 = vmatprep.subr.bf16.mxu1 %v4801_v41  ;;  %2245 = vmatmul.mubr.bf16.gmra.mrb[8].mxu1 %v5083_v30  ;;  %v5137_v41 = vld [vmem:[%s4650_s28 + $0xb4] ss:$76 sps:$4 sm:$0xff]  }
 0x10a   : > { %892 = vrot.lane.b32.xlu1 %v5106_v47, %s4531_s24  ;;  %2104 = vmatpush1.bf16.msra.mxu0 %v4812_v46  ;;  %v5152_v46 = vld [vmem:[%s4650_s28 + $0x144] ss:$76 sps:$4 sm:$0xff]  }
 0x10b   : > { %890 = vrot.lane.b32.xlu0 %v5109_v48, %s4531_s24  ;;  %2105 = vmatprep.subr.bf16.mxu0 %v4807_v45  ;;  %v5149_v45 = vld [vmem:[%s4650_s28 + $0x148] ss:$76 sps:$4 sm:$0xff]  }
 0x10c   : > { %2290 = vmatpush1.bf16.msra.mxu1 %v4781_v33  ;;  %v5140_v19 = vpop.permute.xlu1 %1317  ;;  %2068 = vmatprep.mubr.bf16.mxu0 %v5118_v57 }
 0x10d   : > { %v1316_v1 = vpop.permute.xlu0 %1315  ;;  %2291 = vmatprep.subr.bf16.mxu1 %v4818_v50  ;;  %2069 = vmatmul.mubr.bf16.gmra.mrb[12].mxu0 %v5125_v18  ;;  %v5162_v50 = vld [vmem:[%s6212_s0 + $0x84] ss:$16 sps:$4 sm:$0xff]  }
 0x10e   : > { %896 = vrot.lane.b32.xlu1 %v5131_v34, %s4531_s24  ;;  %2106 = vmatpush1.bf16.msra.mxu0 %v4833_v56  ;;  %v1366_v29 = vsel %vm466_vm0, %v1316_v1, %v5140_v19  ;;  %v1365_v7 = vsel %vm466_vm0, %v1314_v54, %v1316_v1 }
 0x10f   : > { %894 = vrot.lane.b32.xlu0 %v5137_v41, %s4531_s24  ;;  %2107 = vmatprep.subr.bf16.mxu0 %v4847_v63  ;;  %v5176_v63 = vld [vmem:[%s4650_s28 + $0x150] ss:$76 sps:$4 sm:$0xff]  }
 0x110   : > { %2292 = vmatpush1.bf16.msra.mxu1 %v4823_v51  ;;  %v1330_v33 = vpop.permute.xlu1 %1329  ;;  %2254 = vmatprep.mubr.bf16.mxu1 %v5118_v57  ;;  %v1364_v51 = vsel %vm466_vm0, %v1312_v58, %v1314_v54 }
 0x111   : > { %v1310_v56 = vpop.permute.xlu0 %1309  ;;  %2293 = vmatprep.subr.bf16.mxu1 %v4862_v5  ;;  %2255 = vmatmul.mubr.bf16.gmra.mrb[12].mxu1 %v5125_v18  ;;  %v5181_v5 = vld [vmem:[%s4650_s28 + $0x14c] ss:$76 sps:$4 sm:$0xff]  }
 0x112   : > { %910 = vrot.lane.b32.xlu1 %v5149_v45, %s4531_s24  ;;  %2108 = vmatpush1.bf16.msra.mxu0 %v4870_v9  ;;  %v1363_v9 = vsel %vm466_vm0, %v1310_v56, %v1312_v58  ;;  %v4533_v58 = vmov 0  }
 0x113   : > { %908 = vrot.lane.b32.xlu0 %v5152_v46, %s4531_s24  ;;  %2109 = vmatprep.subr.bf16.mxu0 %v1364_v51 }
 0x114   : > { %2294 = vmatpush1.bf16.msra.mxu1 %v4843_v62  ;;  %v1334_v28 = vpop.permute.xlu1 %1333  ;;  %2078 = vmatprep.mubr.bf16.mxu0 %v5162_v50 }
 0x115   : > { %2295 = vmatprep.subr.bf16.mxu1 %v1366_v29  ;;  %v1332_v3 = vpop.permute.xlu0 %1331  ;;  %2079 = vmatmul.mubr.bf16.gmra.mrb[16].mxu0 %v5169_v21 }
 0x116   : > { %914 = vrot.lane.b32.xlu1 %v5176_v63, %s4531_s24  ;;  %2110 = vmatpush1.bf16.msra.mxu0 %v1363_v9  ;;  %v1372_v62 = vsel %vm466_vm0, %v1330_v33, %v1332_v3  ;;  %v1373_v44 = vsel %vm466_vm0, %v1332_v3, %v1334_v28 }
 0x117   : > { %912 = vrot.lane.b32.xlu0 %v5181_v5, %s4531_s24  ;;  %2111 = vmatprep.subr.bf16.mxu0 %v1372_v62 }
 0x118   : > { %2296 = vmatpush1.bf16.msra.mxu1 %v1365_v7  ;;  %v1328_v10 = vpop.permute.xlu1 %1327  ;;  %2264 = vmatprep.mubr.bf16.mxu1 %v5162_v50 }
 0x119   : > { %v1371_v24 = vsel %vm466_vm0, %v1328_v10, %v1330_v33  ;;  %v5202_v27 = vpop.permute.xlu0 %1335  ;;  %2265 = vmatmul.mubr.bf16.gmra.mrb[16].mxu1 %v5169_v21  ;;  %2088 = vmatprep.mubr.bf16.mxu0 %v5192_v25 }
 0x11a   : > { %1000 = vrot.lane.b32.xlu1 %v5071_v11, %s4532_s5  ;;  %2112 = vmatpush1.bf16.msra.mxu0 %v1371_v24  ;;  %v1374_v42 = vsel %vm466_vm0, %v1334_v28, %v5202_v27 }
 0x11b   : > { %998 = vrot.lane.b32.xlu0 %v5075_v17, %s4532_s5  ;;  %2297 = vmatprep.subr.bf16.mxu1 %v1374_v42 }
 0x11c   : > { %2298 = vmatpush1.bf16.msra.mxu1 %v1373_v44  ;;  %v1350_v49 = vpop.permute.xlu1 %1349  ;;  %2274 = vmatprep.mubr.bf16.mxu1 %v5192_v25  ;;  %v5262_v44 = vld [vmem:[%s4664_s8 + $0x18] ss:$76 sps:$4 sm:$0xff]  }
 0x11d   : > { %v1348_v54 = vpop.permute.xlu0 %1347  ;;  %2089 = vmatmul.mubr.bf16.gmra.mrb[20].mxu0 %v5209_v31  ;;  %4055 = vset.pattern.permute.xlu1 %v4533_v58 }
 0x11e   : > { %1004 = vrot.lane.b32.xlu1 %v5090_v38, %s4532_s5  ;;  %v1380_v1 = vsel %vm466_vm0, %v1348_v54, %v1350_v49  ;;  %3698 = vmatprep.mubr.msk.bf16.mxu0 %vm1987_vm2, %v5218_v43 }
 0x11f   : > { %1002 = vrot.lane.b32.xlu0 %v5095_v39, %s4532_s5  ;;  %2113 = vmatprep.subr.bf16.mxu0 %v1380_v1 }
 0x120   : > { %v5232_v33 = vpop.permute.xlu1 %1353  ;;  %4054 = vset.pattern.permute.xlu0 %v4533_v58 }
 0x121   : > { %v1352_v56 = vpop.permute.xlu0 %1351  ;;  %2275 = vmatmul.mubr.bf16.gmra.mrb[20].mxu1 %v5209_v31 }
 0x122   : > { %1018 = vrot.lane.b32.xlu1 %v5106_v47, %s4532_s5  ;;  %v1382_v38 = vsel %vm466_vm0, %v1352_v56, %v5232_v33  ;;  %v1381_v51 = vsel %vm466_vm0, %v1350_v49, %v1352_v56  ;;  %3704 = vmatprep.mubr.msk.bf16.mxu1 %vm1987_vm2, %v5218_v43  ;;  %v5265_v49 = vld [vmem:[%s4664_s8 + $0x14] ss:$76 sps:$4 sm:$0xff]   ;;  %v5331_v43 = vld [vmem:[%s4664_s8 + $0x150] ss:$76 sps:$4 sm:$0xff]  }
 0x123   : > { %1016 = vrot.lane.b32.xlu0 %v5109_v48, %s4532_s5  ;;  %2299 = vmatprep.subr.bf16.mxu1 %v1382_v38  ;;  %v5274_v56 = vld [vmem:[%s4664_s8 + $0x20] ss:$76 sps:$4 sm:$0xff]   ;;  %v5279_v38 = vld [vmem:[%s4664_s8 + $0x1c] ss:$76 sps:$4 sm:$0xff]  }
 0x124   : > { %2300 = vmatpush1.bf16.msra.mxu1 %v1381_v51  ;;  %v1438_v28 = vpop.permute.xlu1 %1437 }
 0x125   : > { %v1346_v29 = vpop.permute.xlu0 %1345 }
 0x126   : > { %v1379_v9 = vsel %vm466_vm0, %v1346_v29, %v1348_v54  ;;  %1022 = vrot.lane.b32.xlu1 %v5131_v34, %s4532_s5 }
 0x127   : > { %1020 = vrot.lane.b32.xlu0 %v5137_v41, %s4532_s5  ;;  %2114 = vmatpush1.bf16.msra.mxu0 %v1379_v9 }
 0x128   : > { %v1442_v3 = vpop.permute.xlu1 %1441 }
 0x129   : > { %v1440_v62 = vpop.permute.xlu0 %1439 }
 0x12a   : > { %1036 = vrot.lane.b32.xlu1 %v5149_v45, %s4532_s5  ;;  %v1490_v7 = vsel %vm593_vm1, %v1438_v28, %v1440_v62  ;;  %v1491_v54 = vsel %vm593_vm1, %v1440_v62, %v1442_v3  ;;  %v5292_v62 = vld [vmem:[%s4664_s8 + $0xac] ss:$76 sps:$4 sm:$0xff]  }
 0x12b   : > { %1034 = vrot.lane.b32.xlu0 %v5152_v46, %s4532_s5  ;;  %2115 = vmatprep.subr.bf16.mxu0 %v1490_v7 }
 0x12c   : > { %v1436_v10 = vpop.permute.xlu1 %1435 }
 0x12d   : > { %v1489_v34 = vsel %vm593_vm1, %v1436_v10, %v1438_v28  ;;  %v5255_v24 = vpop.permute.xlu0 %1443 }
 0x12e   : > { %6226 = vst [vmem:[#allocation7_spill] sm:$0xff] %v5255_v24  ;;  %1040 = vrot.lane.b32.xlu1 %v5176_v63, %s4532_s5  ;;  %2116 = vmatpush1.bf16.msra.mxu0 %v1489_v34  ;;  %v1492_v42 = vsel %vm593_vm1, %v1442_v3, %v5255_v24  ;;  %v5289_v3 = vld [vmem:[%s4664_s8 + $0xb0] ss:$76 sps:$4 sm:$0xff]  }
 0x12f   : > { %1038 = vrot.lane.b32.xlu0 %v5181_v5, %s4532_s5  ;;  %2301 = vmatprep.subr.bf16.mxu1 %v1492_v42  ;;  %v5300_v42 = vld [vmem:[%s4664_s8 + $0xb8] ss:$76 sps:$4 sm:$0xff]  }
 0x130   : > { %2302 = vmatpush1.bf16.msra.mxu1 %v1491_v54  ;;  %v1458_v58 = vpop.permute.xlu1 %1457  ;;  %v5305_v54 = vld [vmem:[%s4664_s8 + $0xb4] ss:$76 sps:$4 sm:$0xff]  }
 0x131   : > { %v1456_v63 = vpop.permute.xlu0 %1455 }
 0x132   : > { %1321 = vrot.lane.b32.xlu1 %v5262_v44, %s4531_s24  ;;  %v1498_v1 = vsel %vm593_vm1, %v1456_v63, %v1458_v58 }
 0x133   : > { %1319 = vrot.lane.b32.xlu0 %v5265_v49, %s4531_s24  ;;  %2117 = vmatprep.subr.bf16.mxu0 %v1498_v1 }
 0x134   : > { %v5281_v51 = vpop.permute.xlu1 %1461 }
 0x135   : > { %6227 = vst [vmem:[#allocation8_spill] sm:$0xff] %v5281_v51  ;;  %v1460_v28 = vpop.permute.xlu0 %1459 }
 0x136   : > { %v1499_v29 = vsel %vm593_vm1, %v1458_v58, %v1460_v28  ;;  %1325 = vrot.lane.b32.xlu1 %v5274_v56, %s4531_s24  ;;  %v1500_v9 = vsel %vm593_vm1, %v1460_v28, %v5281_v51  ;;  %v5324_v51 = vld [vmem:[%s6212_s0 + $0x8] ss:$16 sps:$4 sm:$0xff]  }
 0x137   : > { %1323 = vrot.lane.b32.xlu0 %v5279_v38, %s4531_s24  ;;  %2303 = vmatprep.subr.bf16.mxu1 %v1500_v9 }
 0x138   : > { %2304 = vmatpush1.bf16.msra.mxu1 %v1499_v29  ;;  %v1474_v7 = vpop.permute.xlu1 %1473  ;;  %v5314_v29 = vld [vmem:[%s4664_s8 + $0x144] ss:$76 sps:$4 sm:$0xff]  }
 0x139   : > { %v1454_v10 = vpop.permute.xlu0 %1453 }
 0x13a   : > { %v1497_v34 = vsel %vm593_vm1, %v1454_v10, %v1456_v63  ;;  %1339 = vrot.lane.b32.xlu1 %v5289_v3, %s4531_s24  ;;  %v5311_v63 = vld [vmem:[%s4664_s8 + $0x148] ss:$76 sps:$4 sm:$0xff]  }
 0x13b   : > { %1337 = vrot.lane.b32.xlu0 %v5292_v62, %s4531_s24  ;;  %2118 = vmatpush1.bf16.msra.mxu0 %v1497_v34 }
 0x13c   : > { %v1478_v58 = vpop.permute.xlu1 %1477 }
 0x13d   : > { %v1476_v1 = vpop.permute.xlu0 %1475 }
 0x13e   : > { %1343 = vrot.lane.b32.xlu1 %v5300_v42, %s4531_s24  ;;  %v1506_v28 = vsel %vm593_vm1, %v1474_v7, %v1476_v1 }
 0x13f   : > { %1341 = vrot.lane.b32.xlu0 %v5305_v54, %s4531_s24  ;;  %2119 = vmatprep.subr.bf16.mxu0 %v1506_v28  ;;  %v1507_v28 = vsel %vm593_vm1, %v1476_v1, %v1478_v58  ;;  %v5361_v1 = vld [vmem:[%s6212_s0 + $0x28] ss:$16 sps:$4 sm:$0xff]  }
 0x140   : > { %v1472_v9 = vpop.permute.xlu1 %1471 }
 0x141   : > { %v1505_v10 = vsel %vm593_vm1, %v1472_v9, %v1474_v7  ;;  %v5319_v34 = vpop.permute.xlu0 %1479  ;;  %v5337_v7 = vld [vmem:[%s4664_s8 + $0x14c] ss:$76 sps:$4 sm:$0xff]  }
 0x142   : > { %1357 = vrot.lane.b32.xlu1 %v5311_v63, %s4531_s24  ;;  %2120 = vmatpush1.bf16.msra.mxu0 %v1505_v10  ;;  %v1508_v24 = vsel %vm593_vm1, %v1478_v58, %v5319_v34  ;;  %v5345_v58 = vld [vmem:[%s6212_s0 + $0x2c] ss:$16 sps:$4 sm:$0xff]   ;;  %v4466_v10 = vld [vmem:[%s4630_s13 + $0xa8] ss:$76 sps:$4 sm:$0xff]  }
 0x143   : > { %1355 = vrot.lane.b32.xlu0 %v5314_v29, %s4531_s24  ;;  %2305 = vmatprep.subr.bf16.mxu1 %v1508_v24  ;;  %v4465_v24 = vld [vmem:[%s4630_s13 + $0x10] ss:$76 sps:$4 sm:$0xff]  }
 0x144   : > { %2306 = vmatpush1.bf16.msra.mxu1 %v1507_v28  ;;  %v425_v9 = vpop.permute.xlu1 %424  ;;  %2378 = vmatprep.subr.bf16.mxu0 %v4932_v61  ;;  %v4467_v28 = vld [vmem:[%s4630_s13 + $0x140] ss:$76 sps:$4 sm:$0xff]  }
 0x145   : > { %v423_v31 = vpop.permute.xlu0 %422  ;;  %2132 = vmatmul.mubr.bf16.vlgmr.msra.gmra.mrb[0].mxu0 %v5324_v51  ;;  %2564 = vmatprep.subr.bf16.mxu1 %v4948_v15 }
 0x146   : > { %1361 = vrot.lane.b32.xlu1 %v5331_v43, %s4531_s24  ;;  %2379 = vmatpush1.bf16.msra.mxu0 %v4465_v24  ;;  %v471_v24 = vsel %vm466_vm0, %v4787_v35, %v423_v31 }
 0x147   : > { %1359 = vrot.lane.b32.xlu0 %v5337_v7, %s4531_s24  ;;  %2318 = vmatmul.mubr.bf16.vlgmr.msra.gmra.mrb[0].mxu1 %v5324_v51 }
 0x148   : > { %2565 = vmatpush1.bf16.msra.mxu1 %v4926_v60  ;;  %v429_v61 = vpop.permute.xlu1 %428  ;;  %2380 = vmatprep.subr.bf16.mxu0 %v4962_v22 }
 0x149   : > { %v427_v15 = vpop.permute.xlu0 %426  ;;  %2566 = vmatprep.subr.bf16.mxu1 %v4976_v6  ;;  %3699 = vmatprep.mubr.msk.bf16.mxu0 %vm1987_vm2, %v5345_v58  ;;  %v5377_v6 = vld [vmem:[%s6212_s0 + $0x4c] ss:$16 sps:$4 sm:$0xff]  }
 0x14a   : > { %1447 = vrot.lane.b32.xlu1 %v5262_v44, %s4532_s5  ;;  %2381 = vmatpush1.bf16.msra.mxu0 %v4466_v10  ;;  %v5395_v10 = vld [vmem:[%s6212_s0 + $0x48] ss:$16 sps:$4 sm:$0xff]  }
 0x14b   : > { %1445 = vrot.lane.b32.xlu0 %v5265_v49, %s4532_s5  ;;  %3705 = vmatprep.mubr.msk.bf16.mxu1 %vm1987_vm2, %v5345_v58 }
 0x14c   : > { %2567 = vmatpush1.bf16.msra.mxu1 %v4957_v23  ;;  %v443_v60 = vpop.permute.xlu1 %442  ;;  %2382 = vmatprep.subr.bf16.mxu0 %v4988_v13  ;;  %v472_v23 = vsel %vm466_vm0, %v423_v31, %v425_v9 }
 0x14d   : > { %v441_v22 = vpop.permute.xlu0 %440  ;;  %2142 = vmatmul.mubr.bf16.gmra.mrb[4].mxu0 %v5361_v1  ;;  %2568 = vmatprep.subr.bf16.mxu1 %v5000_v32  ;;  %v474_v32 = vsel %vm466_vm0, %v427_v15, %v429_v61  ;;  %v473_v61 = vsel %vm466_vm0, %v425_v9, %v427_v15  ;;  %v5412_v9 = vld [vmem:[%s6212_s0 + $0x6c] ss:$16 sps:$4 sm:$0xff]  }
 0x14e   : > { %1451 = vrot.lane.b32.xlu1 %v5274_v56, %s4532_s5  ;;  %2383 = vmatpush1.bf16.msra.mxu0 %v4467_v28  ;;  %v479_v28 = vsel %vm466_vm0, %v4825_v53, %v441_v22 }
 0x14f   : > { %1449 = vrot.lane.b32.xlu0 %v5279_v38, %s4532_s5  ;;  %2328 = vmatmul.mubr.bf16.gmra.mrb[4].mxu1 %v5361_v1 }
 0x150   : > { %2384 = vmatprep.subr.bf16.mxu0 %v472_v23  ;;  %2569 = vmatpush1.bf16.msra.mxu1 %v4985_v12  ;;  %v447_v13 = vpop.permute.xlu1 %446  ;;  %v480_v12 = vsel %vm466_vm0, %v441_v22, %v443_v60 }
 0x151   : > { %2570 = vmatprep.subr.bf16.mxu1 %v474_v32  ;;  %v445_v56 = vpop.permute.xlu0 %444  ;;  %3700 = vmatprep.mubr.msk.bf16.mxu0 %vm1987_vm2, %v5377_v6 }
 0x152   : > { %1465 = vrot.lane.b32.xlu1 %v5289_v3, %s4532_s5  ;;  %2385 = vmatpush1.bf16.msra.mxu0 %v471_v24  ;;  %v482_v31 = vsel %vm466_vm0, %v445_v56, %v447_v13  ;;  %v481_v13 = vsel %vm466_vm0, %v443_v60, %v445_v56  ;;  %v5439_v24 = vld [vmem:[%s6212_s0 + $0x8c] ss:$16 sps:$4 sm:$0xff]  }
 0x153   : > { %1463 = vrot.lane.b32.xlu0 %v5292_v62, %s4532_s5  ;;  %2386 = vmatprep.subr.bf16.mxu0 %v480_v12 }
 0x154   : > { %2571 = vmatpush1.bf16.msra.mxu1 %v473_v61  ;;  %v461_v35 = vpop.permute.xlu1 %460  ;;  %3706 = vmatprep.mubr.msk.bf16.mxu1 %vm1987_vm2, %v5377_v6 }
 0x155   : > { %2572 = vmatprep.subr.bf16.mxu1 %v482_v31  ;;  %v459_v23 = vpop.permute.xlu0 %458  ;;  %2152 = vmatmul.mubr.bf16.gmra.mrb[8].mxu0 %v5395_v10  ;;  %v1806_v31 = vld [vmem:[%s6213_s1 + $0x28] sm:$0xff] }
 0x156   : > { %1469 = vrot.lane.b32.xlu1 %v5300_v42, %s4532_s5  ;;  %2387 = vmatpush1.bf16.msra.mxu0 %v479_v28  ;;  %v488_v15 = vsel %vm466_vm0, %v459_v23, %v461_v35  ;;  %v487_v22 = vsel %vm466_vm0, %v4849_v0, %v459_v23  ;;  %v5428_v42 = vld [vmem:[%s6212_s0 + $0x68] ss:$16 sps:$4 sm:$0xff]  }
 0x157   : > { %1467 = vrot.lane.b32.xlu0 %v5305_v54, %s4532_s5  ;;  %2338 = vmatmul.mubr.bf16.gmra.mrb[8].mxu1 %v5395_v10  ;;  %v5465_v23 = vld [vmem:[%s6212_s0 + $0x88] ss:$16 sps:$4 sm:$0xff]  }
 0x158   : > { %2388 = vmatprep.subr.bf16.mxu0 %v488_v15  ;;  %2573 = vmatpush1.bf16.msra.mxu1 %v481_v13  ;;  %v465_v53 = vpop.permute.xlu1 %464 }
 0x159   : > { %v463_v32 = vpop.permute.xlu0 %462  ;;  %3701 = vmatprep.mubr.msk.bf16.mxu0 %vm1987_vm2, %v5412_v9  ;;  %3707 = vmatprep.mubr.msk.bf16.mxu1 %vm1987_vm2, %v5412_v9 }
 0x15a   : > { %v489_v60 = vsel %vm466_vm0, %v461_v35, %v463_v32  ;;  %1483 = vrot.lane.b32.xlu1 %v5311_v63, %s4532_s5  ;;  %2389 = vmatpush1.bf16.msra.mxu0 %v487_v22  ;;  %v490_v0 = vsel %vm466_vm0, %v463_v32, %v465_v53  ;;  %v5472_v53 = vld [vmem:[%s6212_s0 + $0xac] ss:$16 sps:$4 sm:$0xff]   ;;  %v1807_v22 = vld [vmem:[%s6213_s1 + $0x30] sm:$0xff] }
 0x15b   : > { %1481 = vrot.lane.b32.xlu0 %v5314_v29, %s4532_s5  ;;  %2574 = vmatprep.subr.bf16.mxu1 %v490_v0 }
 0x15c   : > { %2575 = vmatpush1.bf16.msra.mxu1 %v489_v60  ;;  %v552_v56 = vpop.permute.xlu1 %551 }
 0x15d   : > { %v550_v12 = vpop.permute.xlu0 %549  ;;  %2162 = vmatmul.mubr.bf16.gmra.mrb[12].mxu0 %v5428_v42 }
 0x15e   : > { %v598_v61 = vsel %vm593_vm1, %v4877_v14, %v550_v12  ;;  %1487 = vrot.lane.b32.xlu1 %v5331_v43, %s4532_s5  ;;  %v599_v35 = vsel %vm593_vm1, %v550_v12, %v552_v56  ;;  %3702 = vmatprep.mubr.msk.bf16.mxu0 %vm1987_vm2, %v5439_v24  ;;  %v1805_v14 = vld [vmem:[%s6213_s1 + $0x20] sm:$0xff]  ;;  %v1808_v12 = vld [vmem:[%s6213_s1 + $0x38] sm:$0xff] }
 0x15f   : > { %1485 = vrot.lane.b32.xlu0 %v5337_v7, %s4532_s5  ;;  %2348 = vmatmul.mubr.bf16.gmra.mrb[12].mxu1 %v5428_v42 }
 0x160   : > { %2390 = vmatprep.subr.bf16.mxu0 %v599_v35  ;;  %v556_v28 = vpop.permute.xlu1 %555  ;;  %3708 = vmatprep.mubr.msk.bf16.mxu1 %vm1987_vm2, %v5439_v24 }
 0x161   : > { %2391 = vmatpush1.bf16.msra.mxu0 %v598_v61  ;;  %v554_v43 = vpop.permute.xlu0 %553  ;;  %v1801_v61 = vld [vmem:[%s6213_s1] sm:$0xff] }
 0x162   : > { %v600_v15 = vsel %vm593_vm1, %v552_v56, %v554_v43  ;;  %v601_v13 = vsel %vm593_vm1, %v554_v43, %v556_v28  ;;  %1840 = vperm.xlu1 %4055, %v1806_v31   ;;  %v5495_v31 = vld [vmem:[%s6212_s0 + $0xa8] ss:$16 sps:$4 sm:$0xff]  }
 0x163   : > { %2576 = vmatprep.subr.bf16.mxu1 %v601_v13  ;;  %1835 = vperm.xlu0 %4054, %v1805_v14   ;;  %v1802_v43 = vld [vmem:[%s6213_s1 + $0x8] sm:$0xff] }
 0x164   : > { %2577 = vmatpush1.bf16.msra.mxu1 %v600_v15  ;;  %v570_v32 = vpop.permute.xlu1 %569  ;;  %v1803_v15 = vld [vmem:[%s6213_s1 + $0x10] sm:$0xff] }
 0x165   : > { %v568_v60 = vpop.permute.xlu0 %567  ;;  %2172 = vmatmul.mubr.bf16.gmra.mrb[16].mxu0 %v5465_v23 }
 0x166   : > { %v606_v0 = vsel %vm593_vm1, %v4892_v36, %v568_v60  ;;  %v607_v56 = vsel %vm593_vm1, %v568_v60, %v570_v32  ;;  %3703 = vmatprep.mubr.msk.bf16.mxu0 %vm1987_vm2, %v5472_v53  ;;  %1845 = vperm.xlu1 %4055, %v1807_v22  }
 0x167   : > { %2358 = vmatmul.mubr.bf16.gmra.mrb[16].mxu1 %v5465_v23  ;;  %2392 = vmatprep.subr.bf16.mxu0 %v607_v56  ;;  %v1804_v56 = vld [vmem:[%s6213_s1 + $0x18] sm:$0xff] }
 0x168   : > { %2393 = vmatpush1.bf16.msra.mxu0 %v606_v0  ;;  %v574_v35 = vpop.permute.xlu1 %573  ;;  %3709 = vmatprep.mubr.msk.bf16.mxu1 %vm1987_vm2, %v5472_v53  ;;  %v4468_v0 = vld [vmem:[%s6212_s0 + $0x4] ss:$16 sps:$4 sm:$0xff]  }
 0x169   : > { %v572_v36 = vpop.permute.xlu0 %571  ;;  %1850 = vperm.xlu0 %4054, %v1808_v12  }
 0x16a   : > { %v608_v28 = vsel %vm593_vm1, %v570_v32, %v572_v36  ;;  %v609_v14 = vsel %vm593_vm1, %v572_v36, %v574_v35  ;;  %1815 = vperm.xlu1 %4055, %v1801_v61  }
 0x16b   : > { %2578 = vmatprep.subr.bf16.mxu1 %v609_v14  ;;  %v1811_v14 = vld [vmem:[%s6213_s1 + $0x50] sm:$0xff] }
 0x16c   : > { %2579 = vmatpush1.bf16.msra.mxu1 %v608_v28  ;;  %v588_v13 = vpop.permute.xlu1 %587  ;;  %v1810_v28 = vld [vmem:[%s6213_s1 + $0x48] sm:$0xff] }
 0x16d   : > { %v586_v22 = vpop.permute.xlu0 %585  ;;  %2182 = vmatmul.mubr.bf16.gmra.mrb[20].mxu0 %v5495_v31  ;;  %1820 = vperm.xlu0 %4054, %v1802_v43   ;;  %v4469_v43 = vld [vmem:[%s4650_s28 + $0x10] ss:$76 sps:$4 sm:$0xff]  }
 0x16e   : > { %v614_v32 = vsel %vm593_vm1, %v4910_v52, %v586_v22  ;;  %v615_v60 = vsel %vm593_vm1, %v586_v22, %v588_v13  ;;  %2410 = vmatprep.mubr.bf16.mxu0 %v4468_v0  ;;  %1825 = vperm.xlu1 %4055, %v1803_v15   ;;  %v1809_v52 = vld [vmem:[%s6213_s1 + $0x40] sm:$0xff]  ;;  %v4470_v22 = vld [vmem:[%s4650_s28 + $0xa8] ss:$76 sps:$4 sm:$0xff]  }
 0x16f   : > { %2368 = vmatmul.mubr.bf16.gmra.mrb[20].mxu1 %v5495_v31  ;;  %2394 = vmatprep.subr.bf16.mxu0 %v615_v60 }
 0x170   : > { %2395 = vmatpush1.bf16.msra.mxu0 %v614_v32  ;;  %v592_v12 = vpop.permute.xlu1 %591  ;;  %2596 = vmatprep.mubr.bf16.mxu1 %v4468_v0 }
 0x171   : > { %v590_v61 = vpop.permute.xlu0 %589  ;;  %2396 = vmatprep.subr.bf16.mxu0 %v5075_v17  ;;  %1830 = vperm.xlu0 %4054, %v1804_v56  }
 0x172   : > { %v616_v35 = vsel %vm593_vm1, %v588_v13, %v590_v61  ;;  %v617_v36 = vsel %vm593_vm1, %v590_v61, %v592_v12  ;;  %1855 = vperm.xlu1 %4055, %v1809_v52   ;;  %v1812_v13 = vld [vmem:[%s6213_s1 + $0x58] sm:$0xff] }
 0x173   : > { %2580 = vmatprep.subr.bf16.mxu1 %v617_v36 }
 0x174   : > { %2397 = vmatpush1.bf16.msra.mxu0 %v4469_v43  ;;  %2581 = vmatpush1.bf16.msra.mxu1 %v616_v35  ;;  %v875_v17 = vpop.permute.xlu1 %874 }
 0x175   : > { %v873_v15 = vpop.permute.xlu0 %872  ;;  %2398 = vmatprep.subr.bf16.mxu0 %v5109_v48  ;;  %2582 = vmatprep.subr.bf16.mxu1 %v5095_v39  ;;  %v4471_v48 = vld [vmem:[%s4650_s28 + $0x140] ss:$76 sps:$4 sm:$0xff]   ;;  %s201_s28 = sand.u32 1, %s4505_s15  }
 0x176   : > { %1860 = vperm.xlu0 %4054, %v1810_v28   ;;  %1865 = vperm.xlu1 %4055, %v1811_v14   ;;  %v921_v0 = vsel %vm466_vm0, %v873_v15, %v875_v17  ;;  %s5797_s15 = sshll.u32 %s201_s28, 7 }
 0x177   : > { %s5904_s5 = scalar_lea.vmem [#allocation4], %s5797_s15 }
 0x178   : > { %2399 = vmatpush1.bf16.msra.mxu0 %v4470_v22  ;;  %2583 = vmatpush1.bf16.msra.mxu1 %v5071_v11  ;;  %v879_v32 = vpop.permute.xlu1 %878  ;;  %v920_v11 = vsel %vm466_vm0, %v4935_v16, %v873_v15 }
 0x179   : > { %v877_v60 = vpop.permute.xlu0 %876  ;;  %2400 = vmatprep.subr.bf16.mxu0 %v5152_v46  ;;  %2584 = vmatprep.subr.bf16.mxu1 %v5137_v41 }
 0x17a   : > { %1870 = vperm.xlu0 %4054, %v1812_v13   ;;  %v923_v41 = vsel %vm466_vm0, %v877_v60, %v879_v32  ;;  %v922_v12 = vsel %vm466_vm0, %v875_v17, %v877_v60 }
 0x17c   : > { %2401 = vmatpush1.bf16.msra.mxu0 %v4471_v48  ;;  %2585 = vmatpush1.bf16.msra.mxu1 %v5106_v47  ;;  %v893_v39 = vpop.permute.xlu1 %892 }
 0x17d   : > { %v891_v56 = vpop.permute.xlu0 %890  ;;  %2402 = vmatprep.subr.bf16.mxu0 %v921_v0  ;;  %2586 = vmatprep.subr.bf16.mxu1 %v5181_v5 }
 0x17e   : > { %v929_v52 = vsel %vm466_vm0, %v891_v56, %v893_v39  ;;  %v928_v61 = vsel %vm466_vm0, %v4978_v8, %v891_v56 }
 0x180   : > { %2403 = vmatpush1.bf16.msra.mxu0 %v920_v11  ;;  %2587 = vmatpush1.bf16.msra.mxu1 %v5149_v45  ;;  %v897_v46 = vpop.permute.xlu1 %896 }
 0x181   : > { %2588 = vmatprep.subr.bf16.mxu1 %v923_v41  ;;  %v895_v47 = vpop.permute.xlu0 %894  ;;  %2404 = vmatprep.subr.bf16.mxu0 %v929_v52 }
 0x182   : > { %v931_v16 = vsel %vm466_vm0, %v895_v47, %v897_v46  ;;  %v930_v28 = vsel %vm466_vm0, %v893_v39, %v895_v47 }
 0x184   : > { %2405 = vmatpush1.bf16.msra.mxu0 %v928_v61  ;;  %2589 = vmatpush1.bf16.msra.mxu1 %v922_v12  ;;  %v911_v5 = vpop.permute.xlu1 %910 }
 0x185   : > { %2590 = vmatprep.subr.bf16.mxu1 %v931_v16  ;;  %v909_v45 = vpop.permute.xlu0 %908 }
 0x186   : > { %v936_v35 = vsel %vm466_vm0, %v5002_v37, %v909_v45  ;;  %v937_v36 = vsel %vm466_vm0, %v909_v45, %v911_v5 }
 0x187   : > { %2406 = vmatprep.subr.bf16.mxu0 %v937_v36 }
 0x188   : > { %2407 = vmatpush1.bf16.msra.mxu0 %v936_v35  ;;  %2591 = vmatpush1.bf16.msra.mxu1 %v930_v28  ;;  %v915_v14 = vpop.permute.xlu1 %914 }
 0x189   : > { %v913_v43 = vpop.permute.xlu0 %912 }
 0x18a   : > { %v938_v8 = vsel %vm466_vm0, %v911_v5, %v913_v43  ;;  %v939_v17 = vsel %vm466_vm0, %v913_v43, %v915_v14 }
 0x18b   : > { %2592 = vmatprep.subr.bf16.mxu1 %v939_v17 }
 0x18c   : > { %2593 = vmatpush1.bf16.msra.mxu1 %v938_v8  ;;  %v1001_v15 = vpop.permute.xlu1 %1000 }
 0x18d   : > { %v999_v13 = vpop.permute.xlu0 %998 }
 0x18e   : > { %v1046_v37 = vsel %vm593_vm1, %v5020_v55, %v999_v13  ;;  %v1047_v22 = vsel %vm593_vm1, %v999_v13, %v1001_v15 }
 0x18f   : > { %2408 = vmatprep.subr.bf16.mxu0 %v1047_v22  ;;  %v6229_v22 = vld [vmem:[#allocation6_spill] sm:$0xff] }
 0x190   : > { %2409 = vmatpush1.bf16.msra.mxu0 %v1046_v37  ;;  %v1005_v32 = vpop.permute.xlu1 %1004  ;;  %v6228_v37 = vld [vmem:[#allocation5_spill] sm:$0xff] }
 0x191   : > { %v1003_v60 = vpop.permute.xlu0 %1002 }
 0x192   : > { %v1048_v48 = vsel %vm593_vm1, %v1001_v15, %v1003_v60  ;;  %v1049_v39 = vsel %vm593_vm1, %v1003_v60, %v1005_v32 }
 0x193   : > { %2594 = vmatprep.subr.bf16.mxu1 %v1049_v39  ;;  %2411 = vmatmul.mubr.bf16.vlgmr.msra.gmra.mrb[24].mxu0 %v5038_v20 }
 0x194   : > { %2595 = vmatpush1.bf16.msra.mxu1 %v1048_v48  ;;  %v1019_v0 = vpop.permute.xlu1 %1018  ;;  %2420 = vmatprep.mubr.bf16.mxu0 %v5030_v59 }
 0x195   : > { %v1017_v56 = vpop.permute.xlu0 %1016 }
 0x196   : > { %v1054_v55 = vsel %vm593_vm1, %v5046_v26, %v1017_v56  ;;  %v1055_v11 = vsel %vm593_vm1, %v1017_v56, %v1019_v0 }
 0x197   : > { %2471 = vmatprep.subr.bf16.mxu0 %v1055_v11  ;;  %2597 = vmatmul.mubr.bf16.vlgmr.msra.gmra.mrb[24].mxu1 %v5038_v20 }
 0x198   : > { %2472 = vmatpush1.bf16.msra.mxu0 %v1054_v55  ;;  %v1023_v46 = vpop.permute.xlu1 %1022  ;;  %2606 = vmatprep.mubr.bf16.mxu1 %v5030_v59 }
 0x199   : > { %v1021_v41 = vpop.permute.xlu0 %1020 }
 0x19a   : > { %v1056_v52 = vsel %vm593_vm1, %v1019_v0, %v1021_v41  ;;  %v1057_v47 = vsel %vm593_vm1, %v1021_v41, %v1023_v46  ;;  %v6231_v46 = vld [vmem:[#allocation8_spill] sm:$0xff] }
 0x19b   : > { %2657 = vmatprep.subr.bf16.mxu1 %v1057_v47  ;;  %2421 = vmatmul.mubr.bf16.gmra.mrb[28].mxu0 %v5052_v2 }
 0x19c   : > { %2658 = vmatpush1.bf16.msra.mxu1 %v1056_v52  ;;  %v1037_v12 = vpop.permute.xlu1 %1036  ;;  %2430 = vmatprep.mubr.bf16.mxu0 %v5063_v4 }
 0x19d   : > { %v1035_v26 = vpop.permute.xlu0 %1034 }
 0x19e   : > { %v1062_v20 = vsel %vm593_vm1, %v5098_v40, %v1035_v26  ;;  %v1063_v61 = vsel %vm593_vm1, %v1035_v26, %v1037_v12  ;;  %v4472_v40 = vld [vmem:[%s4664_s8 + $0x10] ss:$76 sps:$4 sm:$0xff]  }
 0x19f   : > { %2473 = vmatprep.subr.bf16.mxu0 %v1063_v61  ;;  %2607 = vmatmul.mubr.bf16.gmra.mrb[28].mxu1 %v5052_v2 }
 0x1a0   : > { %2474 = vmatpush1.bf16.msra.mxu0 %v1062_v20  ;;  %v1041_v59 = vpop.permute.xlu1 %1040  ;;  %2616 = vmatprep.mubr.bf16.mxu1 %v5063_v4  ;;  %v4473_v4 = vld [vmem:[%s4664_s8 + $0xa8] ss:$76 sps:$4 sm:$0xff]  }
 0x1a1   : > { %v1039_v5 = vpop.permute.xlu0 %1038  ;;  %2475 = vmatprep.subr.bf16.mxu0 %v5265_v49 }
 0x1a2   : > { %v1064_v16 = vsel %vm593_vm1, %v1037_v12, %v1039_v5  ;;  %v1065_v45 = vsel %vm593_vm1, %v1039_v5, %v1041_v59 }
 0x1a3   : > { %2659 = vmatprep.subr.bf16.mxu1 %v1065_v45  ;;  %2431 = vmatmul.mubr.bf16.gmra.mrb[32].mxu0 %v5083_v30 }
 0x1a4   : > { %2476 = vmatpush1.bf16.msra.mxu0 %v4472_v40  ;;  %2660 = vmatpush1.bf16.msra.mxu1 %v1064_v16  ;;  %v1322_v2 = vpop.permute.xlu1 %1321 }
 0x1a5   : > { %v1320_v35 = vpop.permute.xlu0 %1319  ;;  %2477 = vmatprep.subr.bf16.mxu0 %v5292_v62  ;;  %2661 = vmatprep.subr.bf16.mxu1 %v5279_v38  ;;  %v4474_v62 = vld [vmem:[%s4664_s8 + $0x140] ss:$76 sps:$4 sm:$0xff]   ;;  %s5822_s8 = scalar_lea.vmem [#allocation3], %s5797_s15 }
 0x1a6   : > { %2440 = vmatprep.mubr.bf16.mxu0 %v5118_v57 }
 0x1a7   : > { %2617 = vmatmul.mubr.bf16.gmra.mrb[32].mxu1 %v5083_v30  ;;  %v1368_v30 = vsel %vm466_vm0, %v1320_v35, %v1322_v2 }
 0x1a8   : > { %2478 = vmatpush1.bf16.msra.mxu0 %v4473_v4  ;;  %2662 = vmatpush1.bf16.msra.mxu1 %v5262_v44  ;;  %v1326_v49 = vpop.permute.xlu1 %1325  ;;  %v1367_v44 = vsel %vm466_vm0, %v5140_v19, %v1320_v35 }
 0x1a9   : > { %v1324_v36 = vpop.permute.xlu0 %1323  ;;  %2479 = vmatprep.subr.bf16.mxu0 %v5314_v29  ;;  %2663 = vmatprep.subr.bf16.mxu1 %v5305_v54 }
 0x1aa   : > { %2626 = vmatprep.mubr.bf16.mxu1 %v5118_v57 }
 0x1ab   : > { %2441 = vmatmul.mubr.bf16.gmra.mrb[36].mxu0 %v5125_v18 }
 0x1ac   : > { %2480 = vmatpush1.bf16.msra.mxu0 %v4474_v62  ;;  %2664 = vmatpush1.bf16.msra.mxu1 %v5289_v3  ;;  %v1340_v38 = vpop.permute.xlu1 %1339  ;;  %v1370_v3 = vsel %vm466_vm0, %v1324_v36, %v1326_v49 }
 0x1ad   : > { %v1338_v28 = vpop.permute.xlu0 %1337  ;;  %2481 = vmatprep.subr.bf16.mxu0 %v1368_v30  ;;  %2665 = vmatprep.subr.bf16.mxu1 %v5337_v7  ;;  %v1369_v7 = vsel %vm466_vm0, %v1322_v2, %v1324_v36 }
 0x1ae   : > { %2450 = vmatprep.mubr.bf16.mxu0 %v5162_v50  ;;  %v1376_v54 = vsel %vm466_vm0, %v1338_v28, %v1340_v38  ;;  %v1375_v19 = vsel %vm466_vm0, %v5202_v27, %v1338_v28 }
 0x1af   : > { %2627 = vmatmul.mubr.bf16.gmra.mrb[36].mxu1 %v5125_v18 }
 0x1b0   : > { %2482 = vmatpush1.bf16.msra.mxu0 %v1367_v44  ;;  %2666 = vmatpush1.bf16.msra.mxu1 %v5311_v63  ;;  %v1344_v57 = vpop.permute.xlu1 %1343 }
 0x1b1   : > { %2667 = vmatprep.subr.bf16.mxu1 %v1370_v3  ;;  %v1342_v29 = vpop.permute.xlu0 %1341  ;;  %2483 = vmatprep.subr.bf16.mxu0 %v1376_v54 }
 0x1b2   : > { %2636 = vmatprep.mubr.bf16.mxu1 %v5162_v50  ;;  %v1378_v63 = vsel %vm466_vm0, %v1342_v29, %v1344_v57  ;;  %v1377_v8 = vsel %vm466_vm0, %v1340_v38, %v1342_v29 }
 0x1b3   : > { %2451 = vmatmul.mubr.bf16.gmra.mrb[40].mxu0 %v5169_v21 }
 0x1b4   : > { %2484 = vmatpush1.bf16.msra.mxu0 %v1375_v19  ;;  %2668 = vmatpush1.bf16.msra.mxu1 %v1369_v7  ;;  %v1358_v18 = vpop.permute.xlu1 %1357 }
 0x1b5   : > { %2669 = vmatprep.subr.bf16.mxu1 %v1378_v63  ;;  %v1356_v14 = vpop.permute.xlu0 %1355  ;;  %2460 = vmatprep.mubr.bf16.mxu0 %v5192_v25 }
 0x1b6   : > { %v1383_v43 = vsel %vm466_vm0, %v5232_v33, %v1356_v14  ;;  %v1384_v50 = vsel %vm466_vm0, %v1356_v14, %v1358_v18 }
 0x1b7   : > { %2485 = vmatprep.subr.bf16.mxu0 %v1384_v50  ;;  %2637 = vmatmul.mubr.bf16.gmra.mrb[40].mxu1 %v5169_v21  ;;  %v6230_v21 = vld [vmem:[#allocation7_spill] sm:$0xff] }
 0x1b8   : > { %2486 = vmatpush1.bf16.msra.mxu0 %v1383_v43  ;;  %2670 = vmatpush1.bf16.msra.mxu1 %v1377_v8  ;;  %v1362_v27 = vpop.permute.xlu1 %1361 }
 0x1b9   : > { %v1360_v17 = vpop.permute.xlu0 %1359  ;;  %2646 = vmatprep.mubr.bf16.mxu1 %v5192_v25 }
 0x1ba   : > { %v1385_v15 = vsel %vm466_vm0, %v1358_v18, %v1360_v17  ;;  %v1386_v13 = vsel %vm466_vm0, %v1360_v17, %v1362_v27 }
 0x1bb   : > { %2671 = vmatprep.subr.bf16.mxu1 %v1386_v13  ;;  %2461 = vmatmul.mubr.bf16.gmra.mrb[44].mxu0 %v6228_v37 }
 0x1bc   : > { %2672 = vmatpush1.bf16.msra.mxu1 %v1385_v15  ;;  %v1448_v33 = vpop.permute.xlu1 %1447  ;;  %3710 = vmatprep.mubr.msk.bf16.mxu0 %vm1987_vm2, %v6229_v22 }
 0x1bd   : > { %v1446_v32 = vpop.permute.xlu0 %1445 }
 0x1be   : > { %v1493_v60 = vsel %vm593_vm1, %v6230_v21, %v1446_v32  ;;  %v1494_v48 = vsel %vm593_vm1, %v1446_v32, %v1448_v33 }
 0x1bf   : > { %2487 = vmatprep.subr.bf16.mxu0 %v1494_v48  ;;  %2647 = vmatmul.mubr.bf16.gmra.mrb[44].mxu1 %v6228_v37 }
 0x1c0   : > { %2488 = vmatpush1.bf16.msra.mxu0 %v1493_v60  ;;  %v1452_v25 = vpop.permute.xlu1 %1451  ;;  %3716 = vmatprep.mubr.msk.bf16.mxu1 %vm1987_vm2, %v6229_v22 }
 0x1c1   : > { %v1450_v39 = vpop.permute.xlu0 %1449 }
 0x1c2   : > { %v1495_v0 = vsel %vm593_vm1, %v1448_v33, %v1450_v39  ;;  %v1496_v56 = vsel %vm593_vm1, %v1450_v39, %v1452_v25 }
 0x1c3   : > { %2673 = vmatprep.subr.bf16.mxu1 %v1496_v56 }
 0x1c4   : > { %2674 = vmatpush1.bf16.msra.mxu1 %v1495_v0  ;;  %v1466_v55 = vpop.permute.xlu1 %1465 }
 0x1c5   : > { %v1464_v11 = vpop.permute.xlu0 %1463 }
 0x1c6   : > { %v1501_v41 = vsel %vm593_vm1, %v6231_v46, %v1464_v11  ;;  %v1502_v52 = vsel %vm593_vm1, %v1464_v11, %v1466_v55 }
 0x1c7   : > { %2489 = vmatprep.subr.bf16.mxu0 %v1502_v52 }
 0x1c8   : > { %2490 = vmatpush1.bf16.msra.mxu0 %v1501_v41  ;;  %v1470_v47 = vpop.permute.xlu1 %1469 }
 0x1c9   : > { %v1468_v12 = vpop.permute.xlu0 %1467 }
 0x1ca   : > { %v1503_v26 = vsel %vm593_vm1, %v1466_v55, %v1468_v12  ;;  %v1504_v20 = vsel %vm593_vm1, %v1468_v12, %v1470_v47 }
 0x1cb   : > { %2675 = vmatprep.subr.bf16.mxu1 %v1504_v20 }
 0x1cc   : > { %2676 = vmatpush1.bf16.msra.mxu1 %v1503_v26  ;;  %v1484_v61 = vpop.permute.xlu1 %1483 }
 0x1cd   : > { %v1482_v59 = vpop.permute.xlu0 %1481 }
 0x1ce   : > { %v1509_v5 = vsel %vm593_vm1, %v5319_v34, %v1482_v59  ;;  %v1510_v16 = vsel %vm593_vm1, %v1482_v59, %v1484_v61 }
 0x1cf   : > { %2491 = vmatprep.subr.bf16.mxu0 %v1510_v16 }
 0x1d0   : > { %2492 = vmatpush1.bf16.msra.mxu0 %v1509_v5  ;;  %v1488_v45 = vpop.permute.xlu1 %1487 }
 0x1d1   : > { %v1486_v40 = vpop.permute.xlu0 %1485 }
 0x1d2   : > { %v1511_v2 = vsel %vm593_vm1, %v1484_v61, %v1486_v40  ;;  %v1512_v35 = vsel %vm593_vm1, %v1486_v40, %v1488_v45 }
 0x1d3   : > { %2504 = vmatmul.mubr.bf16.vlgmr.msra.gmra.mrb[24].mxu0 %v5324_v51  ;;  %2677 = vmatprep.subr.bf16.mxu1 %v1512_v35 }
 0x1d4   : > { %2678 = vmatpush1.bf16.msra.mxu1 %v1511_v2  ;;  %3711 = vmatprep.mubr.msk.bf16.mxu0 %vm1987_vm2, %v5345_v58 }
 0x1d7   : > { %2690 = vmatmul.mubr.bf16.vlgmr.msra.gmra.mrb[24].mxu1 %v5324_v51 }
 0x1d8   : > { %3717 = vmatprep.mubr.msk.bf16.mxu1 %vm1987_vm2, %v5345_v58 }
 0x1db   : > { %2514 = vmatmul.mubr.bf16.gmra.mrb[28].mxu0 %v5361_v1 }
 0x1dc   : > { %3712 = vmatprep.mubr.msk.bf16.mxu0 %vm1987_vm2, %v5377_v6 }
 0x1df   : > { %2700 = vmatmul.mubr.bf16.gmra.mrb[28].mxu1 %v5361_v1 }
 0x1e0   : > { %3718 = vmatprep.mubr.msk.bf16.mxu1 %vm1987_vm2, %v5377_v6 }
 0x1e1   : > { %v5672_v51 = vpop.permute.xlu1 %1840 }
 0x1e2   : > { %v5674_v34 = vpop.permute.xlu0 %1835 }
 0x1e3   : > { %2524 = vmatmul.mubr.bf16.gmra.mrb[32].mxu0 %v5395_v10 }
 0x1e4   : > { %3713 = vmatprep.mubr.msk.bf16.mxu0 %vm1987_vm2, %v5412_v9 }
 0x1e5   : > { %v5676_v58 = vpop.permute.xlu1 %1845 }
 0x1e7   : > { %2710 = vmatmul.mubr.bf16.gmra.mrb[32].mxu1 %v5395_v10 }
 0x1e8   : > { %3719 = vmatprep.mubr.msk.bf16.mxu1 %vm1987_vm2, %v5412_v9  ;;  %v5678_v1 = vpop.permute.xlu0 %1850 }
 0x1e9   : > { %v5680_v6 = vpop.permute.xlu1 %1815 }
 0x1eb   : > { %2534 = vmatmul.mubr.bf16.gmra.mrb[36].mxu0 %v5428_v42 }
 0x1ec   : > { %3714 = vmatprep.mubr.msk.bf16.mxu0 %vm1987_vm2, %v5439_v24 }
 0x1ed   : > { %v5690_v57 = vpop.permute.xlu1 %1825 }
 0x1ef   : > { %2720 = vmatmul.mubr.bf16.gmra.mrb[36].mxu1 %v5428_v42 }
 0x1f0   : > { %3720 = vmatprep.mubr.msk.bf16.mxu1 %vm1987_vm2, %v5439_v24  ;;  %v5683_v24 = vpop.permute.xlu0 %1820 }
 0x1f3   : > { %2544 = vmatmul.mubr.bf16.gmra.mrb[40].mxu0 %v5465_v23 }
 0x1f4   : > { %3715 = vmatprep.mubr.msk.bf16.mxu0 %vm1987_vm2, %v5472_v53  ;;  %v5695_v18 = vpop.permute.xlu0 %1830 }
 0x1f7   : > { %2730 = vmatmul.mubr.bf16.gmra.mrb[40].mxu1 %v5465_v23 }
 0x1f8   : > { %3721 = vmatprep.mubr.msk.bf16.mxu1 %vm1987_vm2, %v5472_v53 }
 0x1fb   : > { %2554 = vmatmul.mubr.bf16.gmra.mrb[44].mxu0 %v5495_v31 }
 0x1ff   : > { %2740 = vmatmul.mubr.bf16.gmra.mrb[44].mxu1 %v5495_v31 }
 0x218   : > { %v2133_v10 = vpop.f32.mrb[0].mxu0 }
 0x219   : > { %v3802_v9 = vadd.f32 %v2133_v10, %v5680_v6  ;;  %v2135_v42 = vpop.f32.mrb[1].mxu0 }
 0x21a   : > { %v3803_v23 = vadd.f32 %v2135_v42, %v5680_v6  ;;  %v2319_v53 = vpop.f32.mrb[0].mxu1  ;;  %v2137_v31 = vpop.f32.mrb[2].mxu0 }
 0x21b   : > { %v3826_v4 = vadd.f32 %v2319_v53, %v5680_v6  ;;  %v2321_v49 = vpop.f32.mrb[1].mxu1  ;;  %v2139_v36 = vpop.f32.mrb[3].mxu0  ;;  %4209 = vtanh.f32 %v3802_v9  ;;  %v3804_v30 = vadd.f32 %v2137_v31, %v5683_v24 }
 0x21c   : > { %v3827_v62 = vadd.f32 %v2321_v49, %v5680_v6  ;;  %v2323_v38 = vpop.f32.mrb[2].mxu1  ;;  %4211 = vtanh.f32 %v3803_v23  ;;  %v3805_v44 = vadd.f32 %v2139_v36, %v5683_v24 }
 0x21d   : > { %v2325_v28 = vpop.f32.mrb[3].mxu1  ;;  %4213 = vtanh.f32 %v3826_v4  ;;  %v3828_v3 = vadd.f32 %v2323_v38, %v5683_v24 }
 0x21e   : > { %4215 = vtanh.f32 %v3827_v62  ;;  %v3829_v54 = vadd.f32 %v2325_v28, %v5683_v24 }
 0x21f   : > { %4217 = vtanh.f32 %v3804_v30 }
 0x220   : > { %v2143_v29 = vpop.f32.mrb[4].mxu0  ;;  %4219 = vtanh.f32 %v3805_v44 }
 0x221   : > { %v3806_v7 = vadd.f32 %v2143_v29, %v5690_v57  ;;  %v2145_v19 = vpop.f32.mrb[5].mxu0  ;;  %4221 = vtanh.f32 %v3828_v3 }
 0x222   : > { %v3807_v63 = vadd.f32 %v2145_v19, %v5690_v57  ;;  %v2329_v14 = vpop.f32.mrb[4].mxu1  ;;  %v2147_v43 = vpop.f32.mrb[6].mxu0  ;;  %4223 = vtanh.f32 %v3829_v54 }
 0x223   : > { %v3830_v50 = vadd.f32 %v2329_v14, %v5690_v57  ;;  %v2331_v8 = vpop.f32.mrb[5].mxu1  ;;  %v2149_v27 = vpop.f32.mrb[7].mxu0  ;;  %4225 = vtanh.f32 %v3806_v7  ;;  %v3808_v13 = vadd.f32 %v2147_v43, %v5695_v18 }
 0x224   : > { %v3831_v17 = vadd.f32 %v2331_v8, %v5690_v57  ;;  %v2333_v15 = vpop.f32.mrb[6].mxu1  ;;  %4227 = vtanh.f32 %v3807_v63  ;;  %v3809_v33 = vadd.f32 %v2149_v27, %v5695_v18 }
 0x225   : > { %v2335_v37 = vpop.f32.mrb[7].mxu1  ;;  %v5702_v22 = vpop.eup %4209  ;;  %4229 = vtanh.f32 %v3830_v50  ;;  %v3832_v32 = vadd.f32 %v2333_v15, %v5695_v18 }
 0x226   : > { %v5705_v21 = vpop.eup %4211  ;;  %4231 = vtanh.f32 %v3831_v17  ;;  %v3833_v60 = vadd.f32 %v2335_v37, %v5695_v18 }
 0x227   : > { %v5708_v25 = vpop.eup %4213  ;;  %4233 = vtanh.f32 %v3808_v13 }
 0x228   : > { %v2153_v48 = vpop.f32.mrb[8].mxu0  ;;  %v5711_v56 = vpop.eup %4215  ;;  %4235 = vtanh.f32 %v3809_v33 }
 0x229   : > { %v3810_v39 = vadd.f32 %v2153_v48, %v5674_v34  ;;  %v2155_v0 = vpop.f32.mrb[9].mxu0  ;;  %v5714_v41 = vpop.eup %4217  ;;  %4237 = vtanh.f32 %v3832_v32 }
 0x22a   : > { %v3811_v55 = vadd.f32 %v2155_v0, %v5674_v34  ;;  %v2339_v11 = vpop.f32.mrb[8].mxu1  ;;  %v2157_v46 = vpop.f32.mrb[10].mxu0  ;;  %4239 = vtanh.f32 %v3833_v60 }
 0x22b   : > { %v2782_v52 = vmul.f32 0.5, %v3810_v39  ;;  %v3834_v47 = vadd.f32 %v2339_v11, %v5674_v34  ;;  %v3812_v12 = vadd.f32 %v2157_v46, %v5672_v51  ;;  %v2341_v26 = vpop.f32.mrb[9].mxu1  ;;  %v2159_v20 = vpop.f32.mrb[11].mxu0 }
 0x22c   : > { %v5718_v61 = vpop.eup %4219  ;;  %v2783_v59 = vmul.f32 0.5, %v3811_v55  ;;  %v3835_v5 = vadd.f32 %v2341_v26, %v5674_v34  ;;  %v3813_v16 = vadd.f32 %v2159_v20, %v5672_v51  ;;  %v2343_v45 = vpop.f32.mrb[10].mxu1 }
 0x22d   : > { %v5722_v40 = vpop.eup %4221  ;;  %4241 = vtanh.f32 %v2782_v52  ;;  %v2784_v2 = vmul.f32 0.5, %v3834_v47  ;;  %v2790_v35 = vmul.f32 0.5, %v3812_v12  ;;  %v3836_v10 = vadd.f32 %v2343_v45, %v5672_v51  ;;  %v2345_v9 = vpop.f32.mrb[11].mxu1 }
 0x22e   : > { %v5725_v42 = vpop.eup %4223  ;;  %4243 = vtanh.f32 %v2783_v59  ;;  %v2785_v23 = vmul.f32 0.5, %v3835_v5  ;;  %v2791_v53 = vmul.f32 0.5, %v3813_v16  ;;  %v3837_v31 = vadd.f32 %v2345_v9, %v5672_v51  ;;  %v5752_v52 = vpop.permute.xlu1 %1855 }
 0x22f   : > { %v5728_v4 = vpop.eup %4225  ;;  %4245 = vtanh.f32 %v2784_v2  ;;  %v2792_v49 = vmul.f32 0.5, %v3836_v10 }
 0x230   : > { %v5730_v36 = vpop.eup %4227  ;;  %4247 = vtanh.f32 %v2790_v35  ;;  %v2793_v62 = vmul.f32 0.5, %v3837_v31  ;;  %v2163_v38 = vpop.f32.mrb[12].mxu0 }
 0x231   : > { %v5732_v30 = vpop.eup %4229  ;;  %4249 = vtanh.f32 %v2785_v23  ;;  %v3814_v28 = vadd.f32 %v2163_v38, %v5676_v58  ;;  %v2165_v44 = vpop.f32.mrb[13].mxu0 }
 0x232   : > { %v5735_v3 = vpop.eup %4231  ;;  %4251 = vtanh.f32 %v2791_v53  ;;  %v3815_v54 = vadd.f32 %v2165_v44, %v5676_v58  ;;  %v2349_v29 = vpop.f32.mrb[12].mxu1 }
 0x233   : > { %v2167_v7 = vpop.f32.mrb[14].mxu0  ;;  %v5738_v19 = vpop.eup %4233  ;;  %4253 = vtanh.f32 %v2792_v49  ;;  %v2798_v63 = vmul.f32 0.5, %v3814_v28  ;;  %v3838_v14 = vadd.f32 %v2349_v29, %v5676_v58 }
 0x234   : > { %v3816_v43 = vadd.f32 %v2167_v7, %v5678_v1  ;;  %v2351_v50 = vpop.f32.mrb[13].mxu1  ;;  %v2169_v8 = vpop.f32.mrb[15].mxu0  ;;  %4255 = vtanh.f32 %v2793_v62  ;;  %v2799_v17 = vmul.f32 0.5, %v3815_v54 }
 0x235   : > { %v5742_v27 = vpop.eup %4235  ;;  %v3839_v15 = vadd.f32 %v2351_v50, %v5676_v58  ;;  %v3817_v13 = vadd.f32 %v2169_v8, %v5678_v1  ;;  %v2353_v37 = vpop.f32.mrb[14].mxu1  ;;  %4257 = vtanh.f32 %v2798_v63  ;;  %v2800_v32 = vmul.f32 0.5, %v3838_v14 }
 0x236   : > { %v5746_v33 = vpop.eup %4237  ;;  %v2806_v60 = vmul.f32 0.5, %v3816_v43  ;;  %v3840_v48 = vadd.f32 %v2353_v37, %v5678_v1  ;;  %v2355_v39 = vpop.f32.mrb[15].mxu1  ;;  %4259 = vtanh.f32 %v2799_v17 }
 0x237   : > { %v5749_v0 = vpop.eup %4239  ;;  %v2801_v55 = vmul.f32 0.5, %v3839_v15  ;;  %v2807_v11 = vmul.f32 0.5, %v3817_v13  ;;  %v3841_v46 = vadd.f32 %v2355_v39, %v5678_v1  ;;  %4261 = vtanh.f32 %v2800_v32 }
 0x238   : > { %v4242_v47 = vpop.eup %4241  ;;  %v2808_v12 = vmul.f32 0.5, %v3840_v48  ;;  %4263 = vtanh.f32 %v2806_v60  ;;  %v2173_v5 = vpop.f32.mrb[16].mxu0 }
 0x239   : > { %v4244_v26 = vpop.eup %4243  ;;  %v2846_v20 = vmul.f32 0.5, %v4242_v47  ;;  %v2809_v59 = vmul.f32 0.5, %v3841_v46  ;;  %4265 = vtanh.f32 %v2801_v55  ;;  %v3818_v2 = vadd.f32 %v2173_v5, %v5752_v52  ;;  %v2175_v35 = vpop.f32.mrb[17].mxu0 }
 0x23a   : > { %v4246_v16 = vpop.eup %4245  ;;  %v2847_v45 = vmul.f32 0.5, %v4244_v26  ;;  %4267 = vtanh.f32 %v2807_v11  ;;  %v5756_v53 = vadd.f32 %v2175_v35, %v5752_v52  ;;  %v5758_v31 = vpop.f32.mrb[16].mxu1 }
 0x23b   : > { %v4248_v10 = vpop.eup %4247  ;;  %v2878_v9 = vadd.f32 0.5, %v2846_v20  ;;  %v2848_v23 = vmul.f32 0.5, %v4246_v16  ;;  %v5760_v49 = vpop.f32.mrb[18].mxu0  ;;  %4269 = vtanh.f32 %v2808_v12  ;;  %v2910_v44 = vmul.f32 0.5, %v3818_v2 }
 0x23c   : > { %v4250_v62 = vpop.eup %4249  ;;  %v2879_v38 = vadd.f32 0.5, %v2847_v45  ;;  %v2854_v28 = vmul.f32 0.5, %v4248_v10  ;;  %v5762_v54 = vpop.f32.mrb[17].mxu1  ;;  %4271 = vtanh.f32 %v2809_v59 }
 0x23d   : > { %v5764_v29 = vpop.f32.mrb[19].mxu0  ;;  %v4252_v7 = vpop.eup %4251  ;;  %v3038_v63 = vmul.f32 %v5702_v22, %v2878_v9  ;;  %v2880_v14 = vadd.f32 0.5, %v2848_v23  ;;  %v2849_v43 = vmul.f32 0.5, %v4250_v62  ;;  %4273 = vtanh.f32 %v2910_v44 }
 0x23e   : > { %v5767_v50 = vpop.f32.mrb[18].mxu1  ;;  %v4254_v8 = vpop.eup %4253  ;;  %v3039_v17 = vmul.f32 %v5705_v21, %v2879_v38  ;;  %v2886_v15 = vadd.f32 0.5, %v2854_v28  ;;  %v2855_v13 = vmul.f32 0.5, %v4252_v7 }
 0x23f   : > { %v5770_v37 = vpop.f32.mrb[19].mxu1  ;;  %v4256_v32 = vpop.eup %4255  ;;  %4275 = vtanh.f32 %v3038_v63  ;;  %v3040_v60 = vmul.f32 %v5708_v25, %v2880_v14  ;;  %v2881_v48 = vadd.f32 0.5, %v2849_v43  ;;  %v2856_v39 = vmul.f32 0.5, %v4254_v8 }
 0x240   : > { %v4258_v22 = vpop.eup %4257  ;;  %4277 = vtanh.f32 %v3039_v17  ;;  %v3046_v55 = vmul.f32 %v5714_v41, %v2886_v15  ;;  %v2887_v11 = vadd.f32 0.5, %v2855_v13  ;;  %v2857_v46 = vmul.f32 0.5, %v4256_v32  ;;  %v5775_v20 = vpop.f32.mrb[20].mxu0 }
 0x241   : > { %v4260_v47 = vpop.eup %4259  ;;  %4279 = vtanh.f32 %v3040_v60  ;;  %v3041_v21 = vmul.f32 %v5711_v56, %v2881_v48  ;;  %v2888_v12 = vadd.f32 0.5, %v2856_v39  ;;  %v2862_v26 = vmul.f32 0.5, %v4258_v22  ;;  %v5778_v45 = vpop.f32.mrb[21].mxu0 }
 0x242   : > { %v4262_v59 = vpop.eup %4261  ;;  %4281 = vtanh.f32 %v3046_v55  ;;  %v3047_v25 = vmul.f32 %v5718_v61, %v2887_v11  ;;  %v2889_v5 = vadd.f32 0.5, %v2857_v46  ;;  %v2863_v16 = vmul.f32 0.5, %v4260_v47  ;;  %v5781_v56 = vpop.f32.mrb[20].mxu1 }
 0x243   : > { %v4264_v41 = vpop.eup %4263  ;;  %4283 = vtanh.f32 %v3041_v21  ;;  %v3048_v2 = vmul.f32 %v5722_v40, %v2888_v12  ;;  %v2894_v35 = vadd.f32 0.5, %v2862_v26  ;;  %v2864_v10 = vmul.f32 0.5, %v4262_v59  ;;  %v5783_v9 = vpop.f32.mrb[22].mxu0 }
 0x244   : > { %v4266_v23 = vpop.eup %4265  ;;  %4285 = vtanh.f32 %v3047_v25  ;;  %v3049_v62 = vmul.f32 %v5725_v42, %v2889_v5  ;;  %v2895_v61 = vadd.f32 0.5, %v2863_v16  ;;  %v2870_v38 = vmul.f32 0.5, %v4264_v41  ;;  %v5787_v28 = vpop.f32.mrb[21].mxu1 }
 0x245   : > { %v5789_v44 = vpop.f32.mrb[23].mxu0  ;;  %v4268_v7 = vpop.eup %4267  ;;  %4287 = vtanh.f32 %v3048_v2  ;;  %v3054_v40 = vmul.f32 %v5728_v4, %v2894_v35  ;;  %v2896_v63 = vadd.f32 0.5, %v2864_v10  ;;  %v2865_v14 = vmul.f32 0.5, %v4266_v23 }
 0x246   : > { %v5792_v43 = vpop.f32.mrb[22].mxu1  ;;  %v4270_v8 = vpop.eup %4269  ;;  %4289 = vtanh.f32 %v3049_v62  ;;  %v3055_v17 = vmul.f32 %v5730_v36, %v2895_v61  ;;  %v2902_v15 = vadd.f32 0.5, %v2870_v38  ;;  %v2871_v42 = vmul.f32 0.5, %v4268_v7 }
 0x247   : > { %v5795_v13 = vpop.f32.mrb[23].mxu1  ;;  %v4272_v32 = vpop.eup %4271  ;;  %4291 = vtanh.f32 %v3054_v40  ;;  %v3056_v60 = vmul.f32 %v5732_v30, %v2896_v63  ;;  %v2897_v48 = vadd.f32 0.5, %v2865_v14  ;;  %v2872_v4 = vmul.f32 0.5, %v4270_v8 }
 0x248   : > { %v4274_v39 = vpop.eup %4273  ;;  %4293 = vtanh.f32 %v3055_v17  ;;  %v3062_v22 = vmul.f32 %v5738_v19, %v2902_v15  ;;  %v2903_v55 = vadd.f32 0.5, %v2871_v42  ;;  %v2873_v11 = vmul.f32 0.5, %v4272_v32  ;;  %v5806_v25 = vpop.permute.xlu0 %1860 }
 0x249   : > { %v4276_v46 = vpop.eup %4275  ;;  %4295 = vtanh.f32 %v3056_v60  ;;  %v3057_v36 = vmul.f32 %v5735_v3, %v2897_v48  ;;  %v2904_v47 = vadd.f32 0.5, %v2872_v4  ;;  %v2974_v21 = vmul.f32 0.5, %v4274_v39 }
 0x24a   : > { %v5802_v12 = vpop.eup %4277  ;;  %4297 = vtanh.f32 %v3062_v22  ;;  %v3063_v30 = vmul.f32 %v5742_v27, %v2903_v55  ;;  %v2905_v26 = vadd.f32 0.5, %v2873_v11  ;;  %v2911_v59 = vmul.f32 0.5, %v5756_v53 }
 0x24b   : > { %v5808_v19 = vpop.eup %4279  ;;  %v3768_v5 = vpack.c.bf16 %v5802_v12, %v4276_v46  ;;  %4299 = vtanh.f32 %v3057_v36  ;;  %v3064_v3 = vmul.f32 %v5746_v33, %v2904_v47  ;;  %v3006_v16 = vadd.f32 0.5, %v2974_v21 }
 0x24c   : > { %v5812_v41 = vpop.eup %4281  ;;  %4301 = vtanh.f32 %v3063_v30  ;;  %v3065_v2 = vmul.f32 %v5749_v0, %v2905_v26  ;;  %v3842_v27 = vadd.f32 %v5758_v31, %v5752_v52  ;;  %v3843_v53 = vadd.f32 %v5762_v54, %v5752_v52  ;;  %v5831_v31 = vpop.permute.xlu1 %1865 }
 0x24d   : > { %v5819_v35 = vpop.eup %4283  ;;  %3230 = vst [vmem:[%s5822_s8] sm:$0xff] %v3768_v5  ;;  %4303 = vtanh.f32 %v3064_v3  ;;  %v5825_v33 = vmul.f32 %v4276_v46, %v3006_v16  ;;  %v3820_v10 = vadd.f32 %v5760_v49, %v5806_v25  ;;  %v3821_v0 = vadd.f32 %v5764_v29, %v5806_v25  ;;  %v5859_v32 = vpop.permute.xlu0 %1870 }
 0x24e   : > { %v5833_v23 = vpop.eup %4285  ;;  %v3769_v54 = vpack.c.bf16 %v5819_v35, %v5808_v19  ;;  %4305 = vtanh.f32 %v3065_v2  ;;  %v2912_v62 = vmul.f32 0.5, %v3842_v27  ;;  %v2913_v61 = vmul.f32 0.5, %v3843_v53 }
 0x24f   : > { %v5837_v38 = vpop.eup %4287  ;;  %v3772_v7 = vpack.c.bf16 %v5833_v23, %v5812_v41  ;;  %4307 = vtanh.f32 %v2911_v59  ;;  %v2918_v49 = vmul.f32 0.5, %v3820_v10  ;;  %v2919_v40 = vmul.f32 0.5, %v3821_v0 }
 0x250   : > { %v5841_v29 = vpop.eup %4289  ;;  %3231 = vst [vmem:[%s5822_s8 + $0x8] sm:$0xff] %v3769_v54  ;;  %4309 = vtanh.f32 %v2912_v62  ;;  %v3844_v63 = vadd.f32 %v5767_v50, %v5806_v25  ;;  %v3845_v14 = vadd.f32 %v5770_v37, %v5806_v25  ;;  %v3822_v8 = vadd.f32 %v5775_v20, %v5831_v31 }
 0x251   : > { %v5850_v17 = vpop.eup %4291  ;;  %3234 = vst [vmem:[%s5822_s8 + $0x20] sm:$0xff] %v3772_v7  ;;  %v3773_v15 = vpack.c.bf16 %v5841_v29, %v5837_v38  ;;  %4311 = vtanh.f32 %v2913_v61  ;;  %v3823_v42 = vadd.f32 %v5778_v45, %v5831_v31  ;;  %v3846_v50 = vadd.f32 %v5781_v56, %v5831_v31 }
 0x252   : > { %v5861_v60 = vpop.eup %4293  ;;  %4313 = vtanh.f32 %v2918_v49  ;;  %v2920_v37 = vmul.f32 0.5, %v3844_v63  ;;  %v2921_v20 = vmul.f32 0.5, %v3845_v14  ;;  %v2926_v48 = vmul.f32 0.5, %v3822_v8 }
 0x253   : > { %v5863_v4 = vpop.eup %4295  ;;  %3235 = vst [vmem:[%s5822_s8 + $0x28] sm:$0xff] %v3773_v15  ;;  %v3776_v39 = vpack.c.bf16 %v5861_v60, %v5850_v17  ;;  %4315 = vtanh.f32 %v2919_v40  ;;  %v2927_v45 = vmul.f32 0.5, %v3823_v42  ;;  %v2928_v22 = vmul.f32 0.5, %v3846_v50 }
 0x254   : > { %v5868_v55 = vpop.eup %4297  ;;  %4317 = vtanh.f32 %v2920_v37  ;;  %v3847_v56 = vadd.f32 %v5787_v28, %v5831_v31  ;;  %v3824_v11 = vadd.f32 %v5783_v9, %v5859_v32  ;;  %v3825_v46 = vadd.f32 %v5789_v44, %v5859_v32 }
 0x255   : > { %v5876_v36 = vpop.eup %4299  ;;  %3238 = vst [vmem:[%s5822_s8 + $0x40] sm:$0xff] %v3776_v39  ;;  %4319 = vtanh.f32 %v2921_v20  ;;  %v3848_v47 = vadd.f32 %v5792_v43, %v5859_v32  ;;  %v3849_v21 = vadd.f32 %v5795_v13, %v5859_v32 }
 0x256   : > { %v5883_v30 = vpop.eup %4301  ;;  %v3777_v9 = vpack.c.bf16 %v5876_v36, %v5863_v4  ;;  %4321 = vtanh.f32 %v2926_v48  ;;  %v2929_v28 = vmul.f32 0.5, %v3847_v56  ;;  %v2934_v44 = vmul.f32 0.5, %v3824_v11 }
 0x257   : > { %v5887_v26 = vpop.eup %4303  ;;  %v3780_v59 = vpack.c.bf16 %v5883_v30, %v5868_v55  ;;  %4323 = vtanh.f32 %v2927_v45  ;;  %v2935_v43 = vmul.f32 0.5, %v3825_v46  ;;  %v2936_v13 = vmul.f32 0.5, %v3848_v47 }
 0x258   : > { %v5891_v5 = vpop.eup %4305  ;;  %3239 = vst [vmem:[%s5822_s8 + $0x48] sm:$0xff] %v3777_v9  ;;  %4325 = vtanh.f32 %v2928_v22  ;;  %v2937_v2 = vmul.f32 0.5, %v3849_v21 }
 0x259   : > { %v4308_v3 = vpop.eup %4307  ;;  %3242 = vst [vmem:[%s5822_s8 + $0x60] sm:$0xff] %v3780_v59  ;;  %v3781_v16 = vpack.c.bf16 %v5891_v5, %v5887_v26  ;;  %4327 = vtanh.f32 %v2929_v28 }
 0x25a   : > { %v4310_v27 = vpop.eup %4309  ;;  %v2975_v53 = vmul.f32 0.5, %v4308_v3  ;;  %4329 = vtanh.f32 %v2934_v44 }
 0x25b   : > { %v4312_v10 = vpop.eup %4311  ;;  %3243 = vst [vmem:[%s5822_s8 + $0x68] sm:$0xff] %v3781_v16  ;;  %v2976_v0 = vmul.f32 0.5, %v4310_v27  ;;  %4331 = vtanh.f32 %v2935_v43 }
 0x25c   : > { %v4314_v54 = vpop.eup %4313  ;;  %v3007_v62 = vadd.f32 0.5, %v2975_v53  ;;  %v2977_v61 = vmul.f32 0.5, %v4312_v10  ;;  %4333 = vtanh.f32 %v2936_v13 }
 0x25d   : > { %v4316_v7 = vpop.eup %4315  ;;  %v3008_v49 = vadd.f32 0.5, %v2976_v0  ;;  %v2982_v40 = vmul.f32 0.5, %v4314_v54  ;;  %4335 = vtanh.f32 %v2937_v2 }
 0x25e   : > { %v4318_v63 = vpop.eup %4317  ;;  %v3103_v14 = vmul.f32 %v5802_v12, %v3007_v62  ;;  %v3009_v8 = vadd.f32 0.5, %v2977_v61  ;;  %v2983_v15 = vmul.f32 0.5, %v4316_v7 }
 0x25f   : > { %v4320_v42 = vpop.eup %4319  ;;  %v3104_v50 = vmul.f32 %v5808_v19, %v3008_v49  ;;  %v3014_v37 = vadd.f32 0.5, %v2982_v40  ;;  %v2984_v20 = vmul.f32 0.5, %v4318_v63 }
 0x260   : > { %v4322_v48 = vpop.eup %4321  ;;  %v3784_v39 = vpack.c.bf16 %v3103_v14, %v5825_v33  ;;  %v3105_v45 = vmul.f32 %v5819_v35, %v3009_v8  ;;  %v3015_v22 = vadd.f32 0.5, %v2983_v15  ;;  %v2985_v56 = vmul.f32 0.5, %v4320_v42 }
 0x261   : > { %v4324_v11 = vpop.eup %4323  ;;  %v3110_v46 = vmul.f32 %v5812_v41, %v3014_v37  ;;  %v3016_v47 = vadd.f32 0.5, %v2984_v20  ;;  %v2990_v12 = vmul.f32 0.5, %v4322_v48 }
 0x262   : > { %v4326_v21 = vpop.eup %4325  ;;  %3342 = vst [vmem:[%s5904_s5] sm:$0xff] %v3784_v39  ;;  %v3785_v19 = vpack.c.bf16 %v3105_v45, %v3104_v50  ;;  %v3111_v9 = vmul.f32 %v5833_v23, %v3015_v22  ;;  %v3017_v28 = vadd.f32 0.5, %v2985_v56  ;;  %v2991_v33 = vmul.f32 0.5, %v4324_v11 }
 0x263   : > { %v4328_v35 = vpop.eup %4327  ;;  %v3112_v44 = vmul.f32 %v5837_v38, %v3016_v47  ;;  %v3022_v59 = vadd.f32 0.5, %v2990_v12  ;;  %v2992_v43 = vmul.f32 0.5, %v4326_v21 }
 0x264   : > { %v4330_v41 = vpop.eup %4329  ;;  %3343 = vst [vmem:[%s5904_s5 + $0x8] sm:$0xff] %v3785_v19  ;;  %v3788_v13 = vpack.c.bf16 %v3111_v9, %v3110_v46  ;;  %v3113_v3 = vmul.f32 %v5841_v29, %v3017_v28  ;;  %v3023_v16 = vadd.f32 0.5, %v2991_v33  ;;  %v2993_v2 = vmul.f32 0.5, %v4328_v35 }
 0x265   : > { %v4332_v27 = vpop.eup %4331  ;;  %v3118_v53 = vmul.f32 %v5850_v17, %v3022_v59  ;;  %v3024_v23 = vadd.f32 0.5, %v2992_v43  ;;  %v2998_v10 = vmul.f32 0.5, %v4330_v41 }
 0x266   : > { %v4334_v0 = vpop.eup %4333  ;;  %3346 = vst [vmem:[%s5904_s5 + $0x20] sm:$0xff] %v3788_v13  ;;  %v3789_v54 = vpack.c.bf16 %v3113_v3, %v3112_v44  ;;  %v3119_v38 = vmul.f32 %v5861_v60, %v3023_v16  ;;  %v3025_v62 = vadd.f32 0.5, %v2993_v2  ;;  %v2999_v61 = vmul.f32 0.5, %v4332_v27 }
 0x267   : > { %v4336_v7 = vpop.eup %4335  ;;  %v3120_v29 = vmul.f32 %v5863_v4, %v3024_v23  ;;  %v3030_v49 = vadd.f32 0.5, %v2998_v10  ;;  %v3000_v40 = vmul.f32 0.5, %v4334_v0 }
 0x268   : > { %3347 = vst [vmem:[%s5904_s5 + $0x28] sm:$0xff] %v3789_v54  ;;  %v3792_v63 = vpack.c.bf16 %v3119_v38, %v3118_v53  ;;  %v3121_v17 = vmul.f32 %v5876_v36, %v3025_v62  ;;  %v3031_v14 = vadd.f32 0.5, %v2999_v61  ;;  %v3001_v8 = vmul.f32 0.5, %v4336_v7 }
 0x269   : > { %v3126_v15 = vmul.f32 %v5868_v55, %v3030_v49  ;;  %v3032_v42 = vadd.f32 0.5, %v3000_v40 }
 0x26a   : > { %3350 = vst [vmem:[%s5904_s5 + $0x40] sm:$0xff] %v3792_v63  ;;  %v3793_v60 = vpack.c.bf16 %v3121_v17, %v3120_v29  ;;  %v3127_v50 = vmul.f32 %v5883_v30, %v3031_v14  ;;  %v3033_v37 = vadd.f32 0.5, %v3001_v8 }
 0x26b   : > { %v3128_v4 = vmul.f32 %v5887_v26, %v3032_v42 }
 0x26c   : > { %3351 = vst [vmem:[%s5904_s5 + $0x48] sm:$0xff] %v3793_v60  ;;  %v3796_v20 = vpack.c.bf16 %v3127_v50, %v3126_v15  ;;  %v3129_v48 = vmul.f32 %v5891_v5, %v3033_v37 }
 0x26e   : > { %3354 = vst [vmem:[%s5904_s5 + $0x60] sm:$0xff] %v3796_v20  ;;  %v3797_v39 = vpack.c.bf16 %v3129_v48, %v3128_v4 }
 0x270   : > { %3355 = vst [vmem:[%s5904_s5 + $0x68] sm:$0xff] %v3797_v39 }
 0x2a6   : > { %v2505_v36 = vpop.f32.mrb[24].mxu0 }
 0x2a7   : > { %v3850_v45 = vadd.f32 %v2505_v36, %v5680_v6  ;;  %v2507_v22 = vpop.f32.mrb[25].mxu0 }
 0x2a8   : > { %v3851_v55 = vadd.f32 %v2507_v22, %v5680_v6  ;;  %v2509_v56 = vpop.f32.mrb[26].mxu0 }
 0x2a9   : > { %v3852_v11 = vadd.f32 %v2509_v56, %v5683_v24  ;;  %v2511_v30 = vpop.f32.mrb[27].mxu0  ;;  %4337 = vtanh.f32 %v3850_v45 }
 0x2aa   : > { %v3853_v46 = vadd.f32 %v2511_v30, %v5683_v24  ;;  %v2691_v26 = vpop.f32.mrb[24].mxu1  ;;  %4339 = vtanh.f32 %v3851_v55 }
 0x2ab   : > { %v3874_v47 = vadd.f32 %v2691_v26, %v5680_v6  ;;  %v2693_v5 = vpop.f32.mrb[25].mxu1  ;;  %4341 = vtanh.f32 %v3852_v11 }
 0x2ac   : > { %v3875_v12 = vadd.f32 %v2693_v5, %v5680_v6  ;;  %v2695_v21 = vpop.f32.mrb[26].mxu1  ;;  %4343 = vtanh.f32 %v3853_v46 }
 0x2ad   : > { %v3876_v19 = vadd.f32 %v2695_v21, %v5683_v24  ;;  %v2697_v9 = vpop.f32.mrb[27].mxu1  ;;  %4345 = vtanh.f32 %v3874_v47 }
 0x2ae   : > { %v3877_v28 = vadd.f32 %v2697_v9, %v5683_v24  ;;  %v2515_v33 = vpop.f32.mrb[28].mxu0  ;;  %4347 = vtanh.f32 %v3875_v12 }
 0x2af   : > { %v3854_v35 = vadd.f32 %v2515_v33, %v5690_v57  ;;  %v2517_v44 = vpop.f32.mrb[29].mxu0  ;;  %4349 = vtanh.f32 %v3876_v19 }
 0x2b0   : > { %v3855_v59 = vadd.f32 %v2517_v44, %v5690_v57  ;;  %v2519_v43 = vpop.f32.mrb[30].mxu0  ;;  %4351 = vtanh.f32 %v3877_v28 }
 0x2b1   : > { %v3856_v6 = vadd.f32 %v2519_v43, %v5695_v18  ;;  %v2521_v41 = vpop.f32.mrb[31].mxu0  ;;  %4353 = vtanh.f32 %v3854_v35 }
 0x2b2   : > { %v3857_v13 = vadd.f32 %v2521_v41, %v5695_v18  ;;  %v2701_v3 = vpop.f32.mrb[28].mxu1  ;;  %4355 = vtanh.f32 %v3855_v59 }
 0x2b3   : > { %v3878_v24 = vadd.f32 %v2701_v3, %v5690_v57  ;;  %v2703_v16 = vpop.f32.mrb[29].mxu1  ;;  %v5939_v53 = vpop.eup %4337  ;;  %4357 = vtanh.f32 %v3856_v6 }
 0x2b4   : > { %v3879_v2 = vadd.f32 %v2703_v16, %v5690_v57  ;;  %v2705_v27 = vpop.f32.mrb[30].mxu1  ;;  %v5942_v0 = vpop.eup %4339  ;;  %4359 = vtanh.f32 %v3857_v13 }
 0x2b5   : > { %v3880_v23 = vadd.f32 %v2705_v27, %v5695_v18  ;;  %v2707_v10 = vpop.f32.mrb[31].mxu1  ;;  %v5945_v62 = vpop.eup %4341  ;;  %4361 = vtanh.f32 %v3878_v24 }
 0x2b6   : > { %v3881_v54 = vadd.f32 %v2707_v10, %v5695_v18  ;;  %v2525_v38 = vpop.f32.mrb[32].mxu0  ;;  %v5948_v57 = vpop.eup %4343  ;;  %4363 = vtanh.f32 %v3879_v2 }
 0x2b7   : > { %v3858_v61 = vadd.f32 %v2525_v38, %v5674_v34  ;;  %v2527_v7 = vpop.f32.mrb[33].mxu0  ;;  %v5951_v40 = vpop.eup %4345  ;;  %4365 = vtanh.f32 %v3880_v23 }
 0x2b8   : > { %v3859_v29 = vadd.f32 %v2527_v7, %v5674_v34  ;;  %v2529_v49 = vpop.f32.mrb[34].mxu0  ;;  %v5954_v14 = vpop.eup %4347  ;;  %4367 = vtanh.f32 %v3881_v54 }
 0x2b9   : > { %v2786_v63 = vmul.f32 0.5, %v3858_v61  ;;  %v3860_v17 = vadd.f32 %v2529_v49, %v5672_v51  ;;  %v2531_v18 = vpop.f32.mrb[35].mxu0  ;;  %v5957_v60 = vpop.eup %4349 }
 0x2ba   : > { %v2787_v8 = vmul.f32 0.5, %v3859_v29  ;;  %v3861_v15 = vadd.f32 %v2531_v18, %v5672_v51  ;;  %v2711_v42 = vpop.f32.mrb[32].mxu1  ;;  %v5960_v20 = vpop.eup %4351 }
 0x2bb   : > { %4369 = vtanh.f32 %v2786_v63  ;;  %v2794_v50 = vmul.f32 0.5, %v3860_v17  ;;  %v3882_v37 = vadd.f32 %v2711_v42, %v5674_v34  ;;  %v2713_v4 = vpop.f32.mrb[33].mxu1  ;;  %v5963_v45 = vpop.eup %4353 }
 0x2bc   : > { %4371 = vtanh.f32 %v2787_v8  ;;  %v2795_v48 = vmul.f32 0.5, %v3861_v15  ;;  %v3883_v39 = vadd.f32 %v2713_v4, %v5674_v34  ;;  %v2715_v36 = vpop.f32.mrb[34].mxu1  ;;  %v5966_v11 = vpop.eup %4355 }
 0x2bd   : > { %4373 = vtanh.f32 %v2794_v50  ;;  %v2788_v22 = vmul.f32 0.5, %v3882_v37  ;;  %v3884_v55 = vadd.f32 %v2715_v36, %v5672_v51  ;;  %v2717_v56 = vpop.f32.mrb[35].mxu1  ;;  %v5969_v47 = vpop.eup %4357 }
 0x2be   : > { %4375 = vtanh.f32 %v2795_v48  ;;  %v2789_v30 = vmul.f32 0.5, %v3883_v39  ;;  %v3885_v46 = vadd.f32 %v2717_v56, %v5672_v51  ;;  %v2535_v26 = vpop.f32.mrb[36].mxu0  ;;  %v5972_v21 = vpop.eup %4359 }
 0x2bf   : > { %4377 = vtanh.f32 %v2788_v22  ;;  %v2796_v5 = vmul.f32 0.5, %v3884_v55  ;;  %v3862_v34 = vadd.f32 %v2535_v26, %v5676_v58  ;;  %v2537_v12 = vpop.f32.mrb[37].mxu0  ;;  %v5975_v33 = vpop.eup %4361 }
 0x2c0   : > { %4379 = vtanh.f32 %v2789_v30  ;;  %v2797_v19 = vmul.f32 0.5, %v3885_v46  ;;  %v3863_v9 = vadd.f32 %v2537_v12, %v5676_v58  ;;  %v2539_v28 = vpop.f32.mrb[38].mxu0  ;;  %v5978_v59 = vpop.eup %4363 }
 0x2c1   : > { %4381 = vtanh.f32 %v2796_v5  ;;  %v2802_v35 = vmul.f32 0.5, %v3862_v34  ;;  %v3864_v51 = vadd.f32 %v2539_v28, %v5678_v1  ;;  %v2541_v44 = vpop.f32.mrb[39].mxu0  ;;  %v5981_v13 = vpop.eup %4365 }
 0x2c2   : > { %4383 = vtanh.f32 %v2797_v19  ;;  %v2803_v43 = vmul.f32 0.5, %v3863_v9  ;;  %v3865_v6 = vadd.f32 %v2541_v44, %v5678_v1  ;;  %v2721_v41 = vpop.f32.mrb[36].mxu1  ;;  %v5984_v2 = vpop.eup %4367 }
 0x2c3   : > { %4385 = vtanh.f32 %v2802_v35  ;;  %v2810_v3 = vmul.f32 0.5, %v3864_v51  ;;  %v3886_v24 = vadd.f32 %v2721_v41, %v5676_v58  ;;  %v2723_v16 = vpop.f32.mrb[37].mxu1 }
 0x2c4   : > { %4387 = vtanh.f32 %v2803_v43  ;;  %v2811_v27 = vmul.f32 0.5, %v3865_v6  ;;  %v3887_v23 = vadd.f32 %v2723_v16, %v5676_v58  ;;  %v2725_v10 = vpop.f32.mrb[38].mxu1 }
 0x2c5   : > { %v4370_v54 = vpop.eup %4369  ;;  %4389 = vtanh.f32 %v2810_v3  ;;  %v2804_v38 = vmul.f32 0.5, %v3886_v24  ;;  %v3888_v61 = vadd.f32 %v2725_v10, %v5678_v1  ;;  %v2727_v7 = vpop.f32.mrb[39].mxu1 }
 0x2c6   : > { %v4372_v29 = vpop.eup %4371  ;;  %v2850_v49 = vmul.f32 0.5, %v4370_v54  ;;  %4391 = vtanh.f32 %v2811_v27  ;;  %v2805_v63 = vmul.f32 0.5, %v3887_v23  ;;  %v3889_v17 = vadd.f32 %v2727_v7, %v5678_v1  ;;  %v2545_v18 = vpop.f32.mrb[40].mxu0 }
 0x2c7   : > { %v4374_v8 = vpop.eup %4373  ;;  %v2851_v15 = vmul.f32 0.5, %v4372_v29  ;;  %4393 = vtanh.f32 %v2804_v38  ;;  %v2812_v42 = vmul.f32 0.5, %v3888_v61  ;;  %v3866_v58 = vadd.f32 %v2545_v18, %v5752_v52  ;;  %v5990_v50 = vpop.f32.mrb[41].mxu0 }
 0x2c8   : > { %v4376_v37 = vpop.eup %4375  ;;  %v2882_v4 = vadd.f32 0.5, %v2850_v49  ;;  %v2858_v48 = vmul.f32 0.5, %v4374_v8  ;;  %4395 = vtanh.f32 %v2805_v63  ;;  %v2813_v39 = vmul.f32 0.5, %v3889_v17  ;;  %v5992_v36 = vpop.f32.mrb[42].mxu0 }
 0x2c9   : > { %v4378_v22 = vpop.eup %4377  ;;  %v2883_v55 = vadd.f32 0.5, %v2851_v15  ;;  %v2859_v56 = vmul.f32 0.5, %v4376_v37  ;;  %4397 = vtanh.f32 %v2812_v42  ;;  %v2914_v1 = vmul.f32 0.5, %v3866_v58  ;;  %v5994_v30 = vpop.f32.mrb[43].mxu0 }
 0x2ca   : > { %v4380_v46 = vpop.eup %4379  ;;  %v3042_v26 = vmul.f32 %v5939_v53, %v2882_v4  ;;  %v2890_v5 = vadd.f32 0.5, %v2858_v48  ;;  %v2852_v34 = vmul.f32 0.5, %v4378_v22  ;;  %4399 = vtanh.f32 %v2813_v39  ;;  %v5997_v12 = vpop.f32.mrb[40].mxu1 }
 0x2cb   : > { %v4382_v19 = vpop.eup %4381  ;;  %v3043_v9 = vmul.f32 %v5942_v0, %v2883_v55  ;;  %v2891_v28 = vadd.f32 0.5, %v2859_v56  ;;  %v2853_v35 = vmul.f32 0.5, %v4380_v46  ;;  %4401 = vtanh.f32 %v2914_v1  ;;  %v6000_v51 = vpop.f32.mrb[41].mxu1 }
 0x2cc   : > { %v4384_v44 = vpop.eup %4383  ;;  %4403 = vtanh.f32 %v3042_v26  ;;  %v3050_v43 = vmul.f32 %v5945_v62, %v2890_v5  ;;  %v2884_v6 = vadd.f32 0.5, %v2852_v34  ;;  %v2860_v41 = vmul.f32 0.5, %v4382_v19  ;;  %v6003_v53 = vpop.f32.mrb[42].mxu1 }
 0x2cd   : > { %v4386_v3 = vpop.eup %4385  ;;  %4405 = vtanh.f32 %v3043_v9  ;;  %v3051_v24 = vmul.f32 %v5948_v57, %v2891_v28  ;;  %v2885_v16 = vadd.f32 0.5, %v2853_v35  ;;  %v2861_v27 = vmul.f32 0.5, %v4384_v44  ;;  %v6006_v0 = vpop.f32.mrb[43].mxu1 }
 0x2ce   : > { %v4388_v23 = vpop.eup %4387  ;;  %4407 = vtanh.f32 %v3050_v43  ;;  %v3044_v10 = vmul.f32 %v5951_v40, %v2884_v6  ;;  %v2892_v54 = vadd.f32 0.5, %v2860_v41  ;;  %v2866_v38 = vmul.f32 0.5, %v4386_v3  ;;  %v6009_v61 = vpop.f32.mrb[44].mxu0 }
 0x2cf   : > { %v4390_v62 = vpop.eup %4389  ;;  %4409 = vtanh.f32 %v3051_v24  ;;  %v3045_v7 = vmul.f32 %v5954_v14, %v2885_v16  ;;  %v2893_v29 = vadd.f32 0.5, %v2861_v27  ;;  %v2867_v49 = vmul.f32 0.5, %v4388_v23  ;;  %v6012_v63 = vpop.f32.mrb[45].mxu0 }
 0x2d0   : > { %v4392_v57 = vpop.eup %4391  ;;  %4411 = vtanh.f32 %v3044_v10  ;;  %v3052_v17 = vmul.f32 %v5957_v60, %v2892_v54  ;;  %v2898_v18 = vadd.f32 0.5, %v2866_v38  ;;  %v2874_v8 = vmul.f32 0.5, %v4390_v62  ;;  %v6015_v15 = vpop.f32.mrb[46].mxu0 }
 0x2d1   : > { %v4394_v40 = vpop.eup %4393  ;;  %4413 = vtanh.f32 %v3045_v7  ;;  %v3053_v42 = vmul.f32 %v5960_v20, %v2893_v29  ;;  %v2899_v58 = vadd.f32 0.5, %v2867_v49  ;;  %v2875_v37 = vmul.f32 0.5, %v4392_v57  ;;  %v6018_v4 = vpop.f32.mrb[47].mxu0 }
 0x2d2   : > { %v4396_v14 = vpop.eup %4395  ;;  %4415 = vtanh.f32 %v3052_v17  ;;  %v3058_v48 = vmul.f32 %v5963_v45, %v2898_v18  ;;  %v2906_v39 = vadd.f32 0.5, %v2874_v8  ;;  %v2868_v22 = vmul.f32 0.5, %v4394_v40  ;;  %v6021_v55 = vpop.f32.mrb[44].mxu1 }
 0x2d3   : > { %v4398_v60 = vpop.eup %4397  ;;  %4417 = vtanh.f32 %v3053_v42  ;;  %v3059_v56 = vmul.f32 %v5966_v11, %v2899_v58  ;;  %v2907_v1 = vadd.f32 0.5, %v2875_v37  ;;  %v2869_v46 = vmul.f32 0.5, %v4396_v14  ;;  %v6024_v26 = vpop.f32.mrb[45].mxu1 }
 0x2d4   : > { %v4400_v20 = vpop.eup %4399  ;;  %4419 = vtanh.f32 %v3058_v48  ;;  %v3066_v5 = vmul.f32 %v5969_v47, %v2906_v39  ;;  %v2900_v34 = vadd.f32 0.5, %v2868_v22  ;;  %v2876_v19 = vmul.f32 0.5, %v4398_v60  ;;  %v6027_v9 = vpop.f32.mrb[46].mxu1 }
 0x2d5   : > { %v4402_v45 = vpop.eup %4401  ;;  %4421 = vtanh.f32 %v3059_v56  ;;  %v3067_v28 = vmul.f32 %v5972_v21, %v2907_v1  ;;  %v2901_v35 = vadd.f32 0.5, %v2869_v46  ;;  %v2877_v44 = vmul.f32 0.5, %v4400_v20  ;;  %v6030_v43 = vpop.f32.mrb[47].mxu1 }
 0x2d6   : > { %v4404_v11 = vpop.eup %4403  ;;  %4423 = vtanh.f32 %v3066_v5  ;;  %v3060_v6 = vmul.f32 %v5975_v33, %v2900_v34  ;;  %v2908_v41 = vadd.f32 0.5, %v2876_v19  ;;  %v2978_v3 = vmul.f32 0.5, %v4402_v45 }
 0x2d7   : > { %v6033_v24 = vpop.eup %4405  ;;  %4425 = vtanh.f32 %v3067_v28  ;;  %v3061_v47 = vmul.f32 %v5978_v59, %v2901_v35  ;;  %v2909_v16 = vadd.f32 0.5, %v2877_v44  ;;  %v3867_v21 = vadd.f32 %v5990_v50, %v5752_v52 }
 0x2d8   : > { %v6038_v27 = vpop.eup %4407  ;;  %v3770_v23 = vpack.c.bf16 %v6033_v24, %v4404_v11  ;;  %4427 = vtanh.f32 %v3060_v6  ;;  %v3068_v10 = vmul.f32 %v5981_v13, %v2908_v41  ;;  %v3010_v33 = vadd.f32 0.5, %v2978_v3 }
 0x2d9   : > { %v6042_v54 = vpop.eup %4409  ;;  %4429 = vtanh.f32 %v3061_v47  ;;  %v3069_v38 = vmul.f32 %v5984_v2, %v2909_v16  ;;  %v2915_v62 = vmul.f32 0.5, %v3867_v21  ;;  %v3868_v59 = vadd.f32 %v5992_v36, %v5806_v25 }
 0x2da   : > { %v6047_v7 = vpop.eup %4411  ;;  %3232 = vst [vmem:[%s5822_s8 + $0x10] sm:$0xff] %v3770_v23  ;;  %v3774_v50 = vpack.c.bf16 %v6042_v54, %v6038_v27  ;;  %4431 = vtanh.f32 %v3068_v10  ;;  %v6052_v29 = vmul.f32 %v4404_v11, %v3010_v33  ;;  %v3869_v13 = vadd.f32 %v5994_v30, %v5806_v25 }
 0x2db   : > { %v6056_v49 = vpop.eup %4413  ;;  %4433 = vtanh.f32 %v3069_v38  ;;  %v2922_v2 = vmul.f32 0.5, %v3868_v59  ;;  %v3890_v36 = vadd.f32 %v5997_v12, %v5752_v52  ;;  %v3891_v57 = vadd.f32 %v6000_v51, %v5752_v52 }
 0x2dc   : > { %v6062_v17 = vpop.eup %4415  ;;  %3236 = vst [vmem:[%s5822_s8 + $0x30] sm:$0xff] %v3774_v50  ;;  %v3771_v18 = vpack.c.bf16 %v6056_v49, %v6047_v7  ;;  %4435 = vtanh.f32 %v2915_v62  ;;  %v2923_v8 = vmul.f32 0.5, %v3869_v13  ;;  %v3892_v30 = vadd.f32 %v6003_v53, %v5806_v25 }
 0x2dd   : > { %v6069_v40 = vpop.eup %4417  ;;  %4437 = vtanh.f32 %v2922_v2  ;;  %v2916_v42 = vmul.f32 0.5, %v3890_v36  ;;  %v2917_v12 = vmul.f32 0.5, %v3891_v57  ;;  %v3893_v52 = vadd.f32 %v6006_v0, %v5806_v25 }
 0x2de   : > { %v6073_v51 = vpop.eup %4419  ;;  %3233 = vst [vmem:[%s5822_s8 + $0x18] sm:$0xff] %v3771_v18  ;;  %v3775_v58 = vpack.c.bf16 %v6069_v40, %v6062_v17  ;;  %4439 = vtanh.f32 %v2923_v8  ;;  %v2924_v37 = vmul.f32 0.5, %v3892_v30  ;;  %v3870_v53 = vadd.f32 %v6009_v61, %v5831_v31 }
 0x2df   : > { %v6080_v14 = vpop.eup %4421  ;;  %4441 = vtanh.f32 %v2916_v42  ;;  %v2925_v48 = vmul.f32 0.5, %v3893_v52  ;;  %v3871_v39 = vadd.f32 %v6012_v63, %v5831_v31  ;;  %v3872_v25 = vadd.f32 %v6015_v15, %v5859_v32 }
 0x2e0   : > { %v6086_v0 = vpop.eup %4423  ;;  %3237 = vst [vmem:[%s5822_s8 + $0x38] sm:$0xff] %v3775_v58  ;;  %v3778_v22 = vpack.c.bf16 %v6080_v14, %v6073_v51  ;;  %4443 = vtanh.f32 %v2917_v12  ;;  %v2930_v60 = vmul.f32 0.5, %v3870_v53  ;;  %v3873_v61 = vadd.f32 %v6018_v4, %v5859_v32 }
 0x2e1   : > { %v6093_v56 = vpop.eup %4425  ;;  %4445 = vtanh.f32 %v2924_v37  ;;  %v2931_v1 = vmul.f32 0.5, %v3871_v39  ;;  %v2938_v63 = vmul.f32 0.5, %v3872_v25  ;;  %v3894_v15 = vadd.f32 %v6021_v55, %v5831_v31 }
 0x2e2   : > { %v6097_v46 = vpop.eup %4427  ;;  %3240 = vst [vmem:[%s5822_s8 + $0x50] sm:$0xff] %v3778_v22  ;;  %v3782_v20 = vpack.c.bf16 %v6093_v56, %v6086_v0  ;;  %4447 = vtanh.f32 %v2925_v48  ;;  %v2939_v5 = vmul.f32 0.5, %v3873_v61  ;;  %v3895_v4 = vadd.f32 %v6024_v26, %v5831_v31 }
 0x2e3   : > { %v6104_v34 = vpop.eup %4429  ;;  %4449 = vtanh.f32 %v2930_v60  ;;  %v2932_v19 = vmul.f32 0.5, %v3894_v15  ;;  %v3896_v45 = vadd.f32 %v6027_v9, %v5859_v32  ;;  %v3897_v55 = vadd.f32 %v6030_v43, %v5859_v32 }
 0x2e4   : > { %v6110_v28 = vpop.eup %4431  ;;  %3244 = vst [vmem:[%s5822_s8 + $0x70] sm:$0xff] %v3782_v20  ;;  %v3779_v35 = vpack.c.bf16 %v6104_v34, %v6097_v46  ;;  %4451 = vtanh.f32 %v2931_v1  ;;  %v2933_v44 = vmul.f32 0.5, %v3895_v4 }
 0x2e5   : > { %v6115_v31 = vpop.eup %4433  ;;  %4453 = vtanh.f32 %v2938_v63  ;;  %v2940_v26 = vmul.f32 0.5, %v3896_v45  ;;  %v2941_v32 = vmul.f32 0.5, %v3897_v55 }
 0x2e6   : > { %v4436_v11 = vpop.eup %4435  ;;  %3241 = vst [vmem:[%s5822_s8 + $0x58] sm:$0xff] %v3779_v35  ;;  %v3783_v9 = vpack.c.bf16 %v6115_v31, %v6110_v28  ;;  %4455 = vtanh.f32 %v2939_v5 }
 0x2e7   : > { %v4438_v43 = vpop.eup %4437  ;;  %v2979_v6 = vmul.f32 0.5, %v4436_v11  ;;  %4457 = vtanh.f32 %v2932_v19 }
 0x2e8   : > { %v4440_v41 = vpop.eup %4439  ;;  %3245 = vst [vmem:[%s5822_s8 + $0x78] sm:$0xff] %v3783_v9  ;;  %v2986_v3 = vmul.f32 0.5, %v4438_v43  ;;  %4459 = vtanh.f32 %v2933_v44 }
 0x2e9   : > { %v4442_v47 = vpop.eup %4441  ;;  %v3011_v16 = vadd.f32 0.5, %v2979_v6  ;;  %v2987_v21 = vmul.f32 0.5, %v4440_v41  ;;  %4461 = vtanh.f32 %v2940_v26 }
 0x2ea   : > { %v4444_v23 = vpop.eup %4443  ;;  %v3018_v10 = vadd.f32 0.5, %v2986_v3  ;;  %v2980_v33 = vmul.f32 0.5, %v4442_v47  ;;  %4463 = vtanh.f32 %v2941_v32 }
 0x2eb   : > { %v4446_v38 = vpop.eup %4445  ;;  %v3107_v62 = vmul.f32 %v6033_v24, %v3011_v16  ;;  %v3019_v59 = vadd.f32 0.5, %v2987_v21  ;;  %v2981_v50 = vmul.f32 0.5, %v4444_v23 }
 0x2ec   : > { %v4448_v13 = vpop.eup %4447  ;;  %v3114_v2 = vmul.f32 %v6038_v27, %v3018_v10  ;;  %v3012_v36 = vadd.f32 0.5, %v2980_v33  ;;  %v2988_v57 = vmul.f32 0.5, %v4446_v38  ;;  %v3396_v10 = vld [vmem:[%s5822_s8 + $0x28] sm:$0xff] (%p4605_p5)  ;;  %v3398_v33 = vld [vmem:[%s5822_s8 + $0x30] sm:$0xff] (%p4605_p5)  ;;  %v3400_v38 = vld [vmem:[%s5822_s8 + $0x38] sm:$0xff] (%p4605_p5) }
 0x2ed   : > { %v4450_v18 = vpop.eup %4449  ;;  %v3786_v8 = vpack.c.bf16 %v3107_v62, %v6052_v29  ;;  %v3115_v30 = vmul.f32 %v6042_v54, %v3019_v59  ;;  %v3013_v42 = vadd.f32 0.5, %v2981_v50  ;;  %v2989_v12 = vmul.f32 0.5, %v4448_v13  ;;  %v3402_v62 = vld [vmem:[%s5822_s8 + $0x40] sm:$0xff] (%p4605_p5)  ;;  %v3404_v59 = vld [vmem:[%s5822_s8 + $0x48] sm:$0xff] (%p4605_p5)  ;;  %v3406_v50 = vld [vmem:[%s5822_s8 + $0x50] sm:$0xff] (%p4605_p5)  ;;  %3397 = vst [vmem:[%s3373_s9 + $0x48] sm:$0xff] (%p4605_p5), %v3396_v10 }
 0x2ee   : > { %v4452_v52 = vpop.eup %4451  ;;  %v3108_v58 = vmul.f32 %v6047_v7, %v3012_v36  ;;  %v3020_v24 = vadd.f32 0.5, %v2988_v57  ;;  %v2994_v37 = vmul.f32 0.5, %v4450_v18  ;;  %v3408_v13 = vld [vmem:[%s5822_s8 + $0x58] sm:$0xff] (%p4605_p5)  ;;  %3399 = vst [vmem:[%s3373_s9 + $0x50] sm:$0xff] (%p4605_p5), %v3398_v33  ;;  %3401 = vst [vmem:[%s3373_s9 + $0x58] sm:$0xff] (%p4605_p5), %v3400_v38  ;;  %v3412_v36 = vld [vmem:[%s5822_s8 + $0x68] sm:$0xff] (%p4605_p5) }
 0x2ef   : > { %v4454_v53 = vpop.eup %4453  ;;  %3344 = vst [vmem:[%s5904_s5 + $0x10] sm:$0xff] %v3786_v8  ;;  %v3790_v48 = vpack.c.bf16 %v3115_v30, %v3114_v2  ;;  %v3109_v27 = vmul.f32 %v6056_v49, %v3013_v42  ;;  %v3021_v39 = vadd.f32 0.5, %v2989_v12  ;;  %v2995_v25 = vmul.f32 0.5, %v4452_v52  ;;  %3403 = vst [vmem:[%s3373_s9 + $0x80] sm:$0xff] (%p4605_p5), %v3402_v62  ;;  %v3410_v2 = vld [vmem:[%s5822_s8 + $0x60] sm:$0xff] (%p4605_p5)  ;;  %v3414_v57 = vld [vmem:[%s5822_s8 + $0x70] sm:$0xff] (%p4605_p5) }
 0x2f0   : > { %v4456_v22 = vpop.eup %4455  ;;  %v3116_v29 = vmul.f32 %v6062_v17, %v3020_v24  ;;  %v3026_v54 = vadd.f32 0.5, %v2994_v37  ;;  %v3002_v60 = vmul.f32 0.5, %v4454_v53  ;;  %3405 = vst [vmem:[%s3373_s9 + $0x88] sm:$0xff] (%p4605_p5), %v3404_v59  ;;  %3407 = vst [vmem:[%s3373_s9 + $0x90] sm:$0xff] (%p4605_p5), %v3406_v50  ;;  %v3416_v18 = vld [vmem:[%s5822_s8 + $0x78] sm:$0xff] (%p4605_p5) }
 0x2f1   : > { %v4458_v61 = vpop.eup %4457  ;;  %3348 = vst [vmem:[%s5904_s5 + $0x30] sm:$0xff] %v3790_v48  ;;  %v3787_v1 = vpack.c.bf16 %v3109_v27, %v3108_v58  ;;  %v3117_v7 = vmul.f32 %v6069_v40, %v3021_v39  ;;  %v3027_v63 = vadd.f32 0.5, %v2995_v25  ;;  %v3003_v15 = vmul.f32 0.5, %v4456_v22  ;;  %3409 = vst [vmem:[%s3373_s9 + $0x98] sm:$0xff] (%p4605_p5), %v3408_v13 }
 0x2f2   : > { %v4460_v20 = vpop.eup %4459  ;;  %v3122_v5 = vmul.f32 %v6073_v51, %v3026_v54  ;;  %v3034_v49 = vadd.f32 0.5, %v3002_v60  ;;  %v2996_v4 = vmul.f32 0.5, %v4458_v61  ;;  %3411 = vst [vmem:[%s3373_s9 + $0xc0] sm:$0xff] (%p4605_p5), %v3410_v2  ;;  %3413 = vst [vmem:[%s3373_s9 + $0xc8] sm:$0xff] (%p4605_p5), %v3412_v36 }
 0x2f3   : > { %v4462_v19 = vpop.eup %4461  ;;  %3345 = vst [vmem:[%s5904_s5 + $0x18] sm:$0xff] %v3787_v1  ;;  %v3791_v45 = vpack.c.bf16 %v3117_v7, %v3116_v29  ;;  %v3123_v17 = vmul.f32 %v6080_v14, %v3027_v63  ;;  %v3035_v55 = vadd.f32 0.5, %v3003_v15  ;;  %v2997_v35 = vmul.f32 0.5, %v4460_v20  ;;  %3415 = vst [vmem:[%s3373_s9 + $0xd0] sm:$0xff] (%p4605_p5), %v3414_v57 }
 0x2f4   : > { %v4464_v44 = vpop.eup %4463  ;;  %v3130_v40 = vmul.f32 %v6086_v0, %v3034_v49  ;;  %v3028_v26 = vadd.f32 0.5, %v2996_v4  ;;  %v3004_v11 = vmul.f32 0.5, %v4462_v19  ;;  %3417 = vst [vmem:[%s3373_s9 + $0xd8] sm:$0xff] (%p4605_p5), %v3416_v18 }
 0x2f5   : > { %3349 = vst [vmem:[%s5904_s5 + $0x38] sm:$0xff] %v3791_v45  ;;  %v3794_v9 = vpack.c.bf16 %v3123_v17, %v3122_v5  ;;  %v3131_v51 = vmul.f32 %v6093_v56, %v3035_v55  ;;  %v3029_v32 = vadd.f32 0.5, %v2997_v35  ;;  %v3005_v43 = vmul.f32 0.5, %v4464_v44  ;;  %v3386_v56 = vld [vmem:[%s5822_s8] sm:$0xff] (%p4605_p5) }
 0x2f6   : > { %v3124_v6 = vmul.f32 %v6097_v46, %v3028_v26  ;;  %v3036_v41 = vadd.f32 0.5, %v3004_v11  ;;  %v3388_v46 = vld [vmem:[%s5822_s8 + $0x8] sm:$0xff] (%p4605_p5)  ;;  %3387 = vst [vmem:[%s3373_s9] sm:$0xff] (%p4605_p5), %v3386_v56 }
 0x2f7   : > { %3352 = vst [vmem:[%s5904_s5 + $0x50] sm:$0xff] %v3794_v9  ;;  %v3798_v14 = vpack.c.bf16 %v3131_v51, %v3130_v40  ;;  %v3125_v3 = vmul.f32 %v6104_v34, %v3029_v32  ;;  %v3037_v47 = vadd.f32 0.5, %v3005_v43  ;;  %3368 = sbr.rel (!%p4605_p5) target bundleno = 766 (0x2fe), region = 36  ;;  %v3390_v34 = vld [vmem:[%s5822_s8 + $0x10] sm:$0xff] (%p4605_p5)  ;;  %3389 = vst [vmem:[%s3373_s9 + $0x8] sm:$0xff] (%p4605_p5), %v3388_v46 }
 0x2f8   : > { %v3132_v0 = vmul.f32 %v6110_v28, %v3036_v41  ;;  %v3392_v28 = vld [vmem:[%s5822_s8 + $0x18] sm:$0xff] (%p4605_p5)  ;;  %3391 = vst [vmem:[%s3373_s9 + $0x10] sm:$0xff] (%p4605_p5), %v3390_v34 }
 0x2f9   : > { %3356 = vst [vmem:[%s5904_s5 + $0x70] sm:$0xff] %v3798_v14  ;;  %v3795_v16 = vpack.c.bf16 %v3125_v3, %v3124_v6  ;;  %v3133_v21 = vmul.f32 %v6115_v31, %v3037_v47  ;;  %v3394_v31 = vld [vmem:[%s5822_s8 + $0x20] sm:$0xff] (%p4605_p5)  ;;  %3393 = vst [vmem:[%s3373_s9 + $0x18] sm:$0xff] (%p4605_p5), %v3392_v28 }
 0x2fa   : > { %3395 = vst [vmem:[%s3373_s9 + $0x40] sm:$0xff] (%p4605_p5), %v3394_v31 }
 0x2fb   : > { %3353 = vst [vmem:[%s5904_s5 + $0x58] sm:$0xff] %v3795_v16  ;;  %v3799_v23 = vpack.c.bf16 %v3133_v21, %v3132_v0 }
 0x2fd   : > { %3357 = vst [vmem:[%s5904_s5 + $0x78] sm:$0xff] %v3799_v23 }
 0x2fe PF: > { %3423 = sbr.rel (!%p4605_p5) target bundleno = 779 (0x30b), region = 59  ;;  %s3759_s10 = sshll.u32 (%p4605_p5), %s4513_s17, 3  ;;  %v3441_v8 = vld [vmem:[%s5904_s5] sm:$0xff] (%p4605_p5)  ;;  %v3443_v30 = vld [vmem:[%s5904_s5 + $0x8] sm:$0xff] (%p4605_p5)  ;;  %v3445_v42 = vld [vmem:[%s5904_s5 + $0x10] sm:$0xff] (%p4605_p5) }
 0x2ff   : > { %s3760_s24 = sshll.u32 (%p4605_p5), %s4517_s18, 6  ;;  %v3447_v12 = vld [vmem:[%s5904_s5 + $0x18] sm:$0xff] (%p4605_p5)  ;;  %v3449_v52 = vld [vmem:[%s5904_s5 + $0x20] sm:$0xff] (%p4605_p5)  ;;  %v3451_v58 = vld [vmem:[%s5904_s5 + $0x28] sm:$0xff] (%p4605_p5) }
 0x300   : > { %s3426_s26 = sadd.s32 (%p4605_p5), %s3760_s24, %s3759_s10  ;;  %v3453_v24 = vld [vmem:[%s5904_s5 + $0x30] sm:$0xff] (%p4605_p5)  ;;  %v3455_v37 = vld [vmem:[%s5904_s5 + $0x38] sm:$0xff] (%p4605_p5)  ;;  %v3457_v53 = vld [vmem:[%s5904_s5 + $0x40] sm:$0xff] (%p4605_p5) }
 0x301   : > { %s3761_s11 = sshll.u32 (%p4605_p5), %s3426_s26, 2  ;;  %v3459_v48 = vld [vmem:[%s5904_s5 + $0x48] sm:$0xff] (%p4605_p5)  ;;  %v3461_v27 = vld [vmem:[%s5904_s5 + $0x50] sm:$0xff] (%p4605_p5)  ;;  %v3465_v25 = vld [vmem:[%s5904_s5 + $0x60] sm:$0xff] (%p4605_p5) }
 0x302   : > { %s3428_s28 = scalar_lea.vmem (%p4605_p5), %s6216_s4, %s3761_s11  ;;  %v3463_v39 = vld [vmem:[%s5904_s5 + $0x58] sm:$0xff] (%p4605_p5)  ;;  %v3467_v22 = vld [vmem:[%s5904_s5 + $0x68] sm:$0xff] (%p4605_p5)  ;;  %v3469_v29 = vld [vmem:[%s5904_s5 + $0x70] sm:$0xff] (%p4605_p5) }
 0x303   : > { %3442 = vst [vmem:[%s3428_s28] sm:$0xff] (%p4605_p5), %v3441_v8  ;;  %3444 = vst [vmem:[%s3428_s28 + $0x8] sm:$0xff] (%p4605_p5), %v3443_v30 }
 0x304   : > { %3446 = vst [vmem:[%s3428_s28 + $0x10] sm:$0xff] (%p4605_p5), %v3445_v42  ;;  %3448 = vst [vmem:[%s3428_s28 + $0x18] sm:$0xff] (%p4605_p5), %v3447_v12  ;;  %v3471_v54 = vld [vmem:[%s5904_s5 + $0x78] sm:$0xff] (%p4605_p5) }
 0x305   : > { %3450 = vst [vmem:[%s3428_s28 + $0x40] sm:$0xff] %v3449_v52  ;;  %3452 = vst [vmem:[%s3428_s28 + $0x48] sm:$0xff] %v3451_v58 }
 0x306   : > { %3454 = vst [vmem:[%s3428_s28 + $0x50] sm:$0xff] %v3453_v24  ;;  %3456 = vst [vmem:[%s3428_s28 + $0x58] sm:$0xff] %v3455_v37 }
 0x307   : > { %3458 = vst [vmem:[%s3428_s28 + $0x80] sm:$0xff] %v3457_v53  ;;  %3460 = vst [vmem:[%s3428_s28 + $0x88] sm:$0xff] %v3459_v48 }
 0x308   : > { %3462 = vst [vmem:[%s3428_s28 + $0x90] sm:$0xff] %v3461_v27  ;;  %3464 = vst [vmem:[%s3428_s28 + $0x98] sm:$0xff] %v3463_v39 }
 0x309   : > { %3466 = vst [vmem:[%s3428_s28 + $0xc0] sm:$0xff] %v3465_v25  ;;  %3468 = vst [vmem:[%s3428_s28 + $0xc8] sm:$0xff] %v3467_v22 }
 0x30a   : > { %3470 = vst [vmem:[%s3428_s28 + $0xd0] sm:$0xff] %v3469_v29  ;;  %3472 = vst [vmem:[%s3428_s28 + $0xd8] sm:$0xff] %v3471_v54 }
 0x30b PF: > { %s15_s21 = sadd.s32 1, %s4529_s21   ;;  %s6232_s15 = smov %s4509_s16 }
 0x30c   : > { %p12_p10 = scmp.ge.s32.totalorder %s15_s21, 6   ;;  %s6233_s16 = smov %s4616_s30 }
 0x30d   : > { %s6234_s17 = smov %s4521_s19  ;;  %s6235_s18 = smov %s4525_s20 }
 0x30e   : > { %s6236_s19 = smov %s6239_s22  ;;  %s6237_s20 = smov %s6243_s23 }
 0x30f   :  { %14 = sbr.rel (!%p12_p10) target bundleno = 4 (0x4), region = 123 }

</bundles_post_ra>
